<compile_context>
chip_gen: v5e
topology: v5e:2x2
jax: 0.10.0
libtpu: 0.0.40
codegen_flags: <defaults>
</compile_context>

<pallas_src>
from functools import partial

import jax
import jax.numpy as jnp
from jax.experimental import pallas as pl
from jax.experimental.pallas import tpu as pltpu

COMPUTE_DTYPE = jnp.bfloat16   # matmul-path dtype (accumulation stays f32)
LANE = 128                     # conv/fc output channels padded to one lane width


def _round_up(x, m):
    return ((x + m - 1) // m) * m


def _row_tile(m, cap):
    """Row tile (multiple of 16) for an M-row axis: whole thing if small, else
    an exact divisor of round_up(m, 16) when one exists, else `cap` (the grid
    then uses cdiv with zero-padded rows)."""
    m16 = _round_up(m, 16)
    if m16 <= cap:
        return m16
    for t in range(cap, 15, -16):
        if m16 % t == 0:
            return t
    return cap


# ----------------------------- Pallas kernels ------------------------------

def _conv_pool_relu_kernel(p_ref, w_ref, b_ref, o_ref):
    """Fused conv-as-matmul + 2x2 max-pool + bias + ReLU.

    p_ref: (4, tm, KKC)  im2col patches, one slab per pool position (bf16)
    w_ref: (KKC, 128)    weights, (kh, kw, cin)-ordered rows, Cout padded to 128
    b_ref: (1, 128)      bias (f32, zero-padded)
    o_ref: (tm, 128)     pooled+relu'd output rows (lane-dense)
    """
    npos, tm, kkc = p_ref.shape
    cout = o_ref.shape[-1]
    # One long MXU matmul for all 4 pool positions (tm % 16 == 0 so the reshape
    # is layout-preserving), f32 accumulation.
    acc = jnp.dot(p_ref[...].reshape(npos * tm, kkc), w_ref[...],
                  preferred_element_type=jnp.float32)
    # max_pool2d, then bias, then relu (bias is a per-channel constant, so
    # max(a_i) + b == max(a_i + b) — matches torch relu(max_pool2d(conv(x)))).
    m = jnp.max(acc.reshape(npos, tm, cout), axis=0)
    o_ref[...] = jnp.maximum(m + b_ref[...], 0.0).astype(o_ref.dtype)


def _mlp_kernel(x_ref, w1_ref, b1_ref, w2_ref, b2_ref, o_ref):
    """Fused fc1 (+relu) and fc2 for one row tile (weights stay VMEM-resident)."""
    h = jnp.dot(x_ref[...], w1_ref[...], preferred_element_type=jnp.float32)
    h = jnp.maximum(h + b1_ref[...], 0.0)
    o = jnp.dot(h.astype(w2_ref.dtype), w2_ref[...],
                preferred_element_type=jnp.float32)
    o_ref[...] = (o + b2_ref[...]).astype(o_ref.dtype)


# ------------------------------ layer wrappers ------------------------------

def conv_pool_relu(x_nhwc, wmat, bvec, *, ksize=3, row_cap=512):
    """Conv2d(k=3, s=1, p=1) -> maxpool(2) -> relu, fused epilogue.

    x_nhwc: (B, H, W, C>=cin)   wmat: (9*cin, 128)   bvec: (1, 128)
    returns (B, H//2, W//2, 128) NHWC bf16 (channels zero-padded to 128).
    """
    B, H, W, _ = x_nhwc.shape
    Hh, Wh = H // 2, W // 2
    KKC, Cout = wmat.shape
    cin = KKC // (ksize * ksize)

    # Real channels only (zero-padded lanes from the previous layer are dropped
    # here), cast to the compute dtype BEFORE pad / im2col.
    x = x_nhwc[..., :cin].astype(wmat.dtype)
    xp = jnp.pad(x, ((0, 0), (1, 1), (1, 1), (0, 0)))

    # 16 distinct strided slices (dh+kh, dw+kw), reused by the 4 pool groups.
    # Feature order (kh, kw, cin) matches wmat's rows.
    sl = {}
    for a in range(ksize + 1):
        for b in range(ksize + 1):
            sl[(a, b)] = xp[:, a:a + 2 * Hh - 1:2, b:b + 2 * Wh - 1:2, :]

    M = B * Hh * Wh
    groups = []
    for dh in range(2):
        for dw in range(2):
            taps = [sl[(dh + kh, dw + kw)]
                    for kh in range(ksize) for kw in range(ksize)]
            groups.append(jnp.concatenate(taps, axis=-1).reshape(M, KKC))
    p = jnp.stack(groups, axis=0)                          # (4, M, KKC)

    tm = _row_tile(M, row_cap)
    M_pad = _round_up(M, tm)
    if M_pad != M:
        p = jnp.pad(p, ((0, 0), (0, M_pad - M), (0, 0)))

    out = pl.pallas_call(
        _conv_pool_relu_kernel,
        out_shape=jax.ShapeDtypeStruct((M_pad, Cout), wmat.dtype),
        grid=(M_pad // tm,),
        in_specs=[
            pl.BlockSpec((4, tm, KKC), lambda i: (0, i, 0)),
            pl.BlockSpec((KKC, Cout), lambda i: (0, 0)),
            pl.BlockSpec((1, Cout), lambda i: (0, 0)),
        ],
        out_specs=pl.BlockSpec((tm, Cout), lambda i: (i, 0)),
        compiler_params=pltpu.CompilerParams(
            dimension_semantics=("parallel",)),
    )(p, wmat, bvec)
    if M_pad != M:
        out = out[:M]
    return out.reshape(B, Hh, Wh, Cout)


def mlp(x, w1, b1, w2, b2, *, row_cap=256):
    """relu(x @ w1 + b1) @ w2 + b2, tiled over rows (weights resident)."""
    M, K1 = x.shape
    N1 = w1.shape[1]
    N2 = w2.shape[1]
    tm = _row_tile(M, row_cap)
    M_pad = _round_up(M, tm)
    xc = x.astype(w1.dtype)
    if M_pad != M:
        xc = jnp.pad(xc, ((0, M_pad - M), (0, 0)))
    out = pl.pallas_call(
        _mlp_kernel,
        out_shape=jax.ShapeDtypeStruct((M_pad, N2), jnp.float32),
        grid=(M_pad // tm,),
        in_specs=[
            pl.BlockSpec((tm, K1), lambda i: (i, 0)),
            pl.BlockSpec((K1, N1), lambda i: (0, 0)),
            pl.BlockSpec((1, N1), lambda i: (0, 0)),
            pl.BlockSpec((N1, N2), lambda i: (0, 0)),
            pl.BlockSpec((1, N2), lambda i: (0, 0)),
        ],
        out_specs=pl.BlockSpec((tm, N2), lambda i: (i, 0)),
        compiler_params=pltpu.CompilerParams(
            dimension_semantics=("parallel",)),
    )(xc, w1, b1, w2, b2)
    return out[:M] if M_pad != M else out


# ------------------------------ forward pass --------------------------------

def neural_net_forward(x_nchw, prep, *, out_channels):
    x = jnp.transpose(x_nchw, (0, 2, 3, 1))              # NCHW -> NHWC (tiny, 3ch)
    x = conv_pool_relu(x, prep["w1"], prep["b1"])        # (B, H/2, W/2, 128)
    x = conv_pool_relu(x, prep["w2"], prep["b2"])        # (B, H/4, W/4, 128)
    x = conv_pool_relu(x, prep["w3"], prep["b3"])        # (B, 3, 3, 128)
    B = x.shape[0]
    # Plain NHWC flatten; torch's NCHW view(B,-1) ordering was folded into
    # fc1_wT at prep time (no runtime transpose).
    x = x.reshape(B, -1)                                  # (B, 1152)
    out = mlp(x, prep["fc1_wT"], prep["fc1_b"], prep["fc2_wT"], prep["fc2_b"])
    return out[:, :out_channels]


# ------------------------------ param prep ----------------------------------

def init_params(key, in_channels, out_channels, ksize):
    """Same layouts / init scheme as the PyTorch module."""
    ks = jax.random.split(key, 10)

    def uni(k, shape, fan_in):
        bound = 1.0 / jnp.sqrt(fan_in)
        return jax.random.uniform(k, shape, jnp.float32, -bound, bound)

    return {
        "conv1_w": uni(ks[0], (32, in_channels, ksize, ksize), in_channels * ksize * ksize),
        "conv1_b": uni(ks[1], (32,), in_channels * ksize * ksize),
        "conv2_w": uni(ks[2], (64, 32, ksize, ksize), 32 * ksize * ksize),
        "conv2_b": uni(ks[3], (64,), 32 * ksize * ksize),
        "conv3_w": uni(ks[4], (128, 64, ksize, ksize), 64 * ksize * ksize),
        "conv3_b": uni(ks[5], (128,), 64 * ksize * ksize),
        "fc1_w": uni(ks[6], (128, 3 * 3 * 128), 3 * 3 * 128),
        "fc1_b": uni(ks[7], (128,), 3 * 3 * 128),
        "fc2_w": uni(ks[8], (out_channels, 128), 128),
        "fc2_b": uni(ks[9], (out_channels,), 128),
    }


def prepare_params(params, compute_dtype=COMPUTE_DTYPE):
    """One-time weight reshape/transpose/padding (kept OUT of the forward)."""

    def conv_mat(w, b):
        cout, cin, k, _ = w.shape
        wt = jnp.transpose(w, (2, 3, 1, 0))                    # (K, K, Cin, Cout)
        wt = jnp.pad(wt, ((0, 0), (0, 0), (0, 0), (0, LANE - cout)))
        wmat = wt.reshape(k * k * cin, LANE).astype(compute_dtype)   # real Cin rows
        bvec = jnp.pad(b, (0, LANE - cout)).reshape(1, LANE).astype(jnp.float32)
        return wmat, bvec

    w1, b1 = conv_mat(params["conv1_w"], params["conv1_b"])   # KKC = 9*in_ch
    w2, b2 = conv_mat(params["conv2_w"], params["conv2_b"])   # KKC = 288
    w3, b3 = conv_mat(params["conv3_w"], params["conv3_b"])   # KKC = 576

    # fc1: permute input columns from torch's NCHW flatten (c,h,w) to the NHWC
    # flatten (h,w,c) produced by the conv stack.
    fc1_w = params["fc1_w"]                                    # (128, 1152)
    n_hid, n_in = fc1_w.shape
    c3 = n_in // 9
    fc1_w_hwc = (fc1_w.reshape(n_hid, c3, 3, 3)
                 .transpose(0, 2, 3, 1)
                 .reshape(n_hid, n_in))

    n_out = params["fc2_w"].shape[0]
    assert n_out <= LANE
    return {
        "w1": w1, "b1": b1, "w2": w2, "b2": b2, "w3": w3, "b3": b3,
        "fc1_wT": fc1_w_hwc.T.astype(compute_dtype),                  # (1152, 128)
        "fc1_b": params["fc1_b"].reshape(1, -1).astype(jnp.float32),  # (1, 128)
        "fc2_wT": jnp.pad(params["fc2_w"].T,
                          ((0, 0), (0, LANE - n_out))).astype(compute_dtype),
        "fc2_b": jnp.pad(params["fc2_b"],
                         (0, LANE - n_out)).reshape(1, LANE).astype(jnp.float32),
    }


# --------------------------------- main --------------------------------------

if __name__ == "__main__":
    in_channels, out_channels, ksize = 3, 10, 3
    # fc1 expects 3*3*128 features => input spatial must be 24x24
    # (24 -> pool -> 12 -> pool -> 6 -> pool -> 3).
    B, H, W = 2, 24, 24

    key = jax.random.PRNGKey(0)
    k_x, k_p = jax.random.split(key)
    x = jax.random.normal(k_x, (B, in_channels, H, W), jnp.float32)
    params = init_params(k_p, in_channels, out_channels, ksize)
    prep = prepare_params(params)          # one-time weight prep (not per step)

    fwd = jax.jit(partial(neural_net_forward, out_channels=out_channels))
    out = fwd(x, prep)
    out = jax.block_until_ready(out)
    assert out.shape == (B, out_channels), out.shape
    print("KERNEL_OK")
</pallas_src>

<mosaic_0001>
module attributes {stable_mosaic.version = 11 : i64} {
  func.func @_conv_pool_relu_kernel(%arg0: i32, %arg1: memref<4x288x27xbf16, #tpu.memory_space<vmem>>, %arg2: memref<27x128xbf16, #tpu.memory_space<vmem>>, %arg3: memref<1x128xf32, #tpu.memory_space<vmem>>, %arg4: memref<288x128xbf16, #tpu.memory_space<vmem>>) attributes {dimension_semantics = [#tpu.dimension_semantics<parallel>], iteration_bounds = array<i64: 1>, scalar_prefetch = 0 : i64, scratch_operands = 0 : i64, tpu.core_type = #tpu.core_type<tc>, window_params = [{transform_indices = @transform_0, window_bounds = array<i64: 4, 288, 27>}, {pipeline_mode = #tpu.pipeline_mode<synchronous>, transform_indices = @transform_1, window_bounds = array<i64: 27, 128>}, {pipeline_mode = #tpu.pipeline_mode<synchronous>, transform_indices = @transform_2, window_bounds = array<i64: 1, 128>}, {transform_indices = @transform_3, window_bounds = array<i64: 288, 128>}]} {
    %c0 = arith.constant 0 : index
    %c0_0 = arith.constant 0 : index
    %c0_1 = arith.constant 0 : index
    %0 = vector.load %arg1[%c0, %c0_0, %c0_1] : memref<4x288x27xbf16, #tpu.memory_space<vmem>>, vector<4x288x27xbf16>
    %1 = vector.shape_cast %0 : vector<4x288x27xbf16> to vector<1152x27xbf16>
    %c0_2 = arith.constant 0 : index
    %c0_3 = arith.constant 0 : index
    %2 = vector.load %arg2[%c0_2, %c0_3] : memref<27x128xbf16, #tpu.memory_space<vmem>>, vector<27x128xbf16>
    %cst = arith.constant dense<0.000000e+00> : vector<1152x128xf32>
    %3 = tpu.matmul %1, %2, %cst {dimension_numbers = #tpu.dot_dimension_numbers<[1], [0], [0], [1], [0, 0, 1, 1], [], []>} : vector<1152x27xbf16>, vector<27x128xbf16>, vector<1152x128xf32> -> vector<1152x128xf32>
    %4 = vector.shape_cast %3 : vector<1152x128xf32> to vector<4x288x128xf32>
    %cst_4 = arith.constant dense<0xFF800000> : vector<288x128xf32>
    %5 = vector.multi_reduction <maximumf>, %4, %cst_4 [0] : vector<4x288x128xf32> to vector<288x128xf32>
    %c0_5 = arith.constant 0 : index
    %c0_6 = arith.constant 0 : index
    %6 = vector.load %arg3[%c0_5, %c0_6] : memref<1x128xf32, #tpu.memory_space<vmem>>, vector<1x128xf32>
    %7 = vector.broadcast %6 : vector<1x128xf32> to vector<288x128xf32>
    %8 = arith.addf %5, %7 : vector<288x128xf32>
    %cst_7 = arith.constant 0.000000e+00 : f32
    %9 = vector.broadcast %cst_7 : f32 to vector<288x128xf32>
    %10 = arith.maximumf %8, %9 : vector<288x128xf32>
    %11 = arith.truncf %10 : vector<288x128xf32> to vector<288x128xbf16>
    %c0_8 = arith.constant 0 : index
    %c0_9 = arith.constant 0 : index
    %12 = vector.load %arg4[%c0_8, %c0_9] : memref<288x128xbf16, #tpu.memory_space<vmem>>, vector<288x128xbf16>
    tpu.vector_store %arg4[%c0_8, %c0_9], %11 {strides = array<i32>} : memref<288x128xbf16, #tpu.memory_space<vmem>>, vector<288x128xbf16>,
    return
  }
  func.func @transform_0(%arg0: i32) -> (i32, i32, i32) {
    %c0_i32 = arith.constant 0 : i32
    %c0_i32_0 = arith.constant 0 : i32
    %c0_i32_1 = arith.constant 0 : i32
    return %c0_i32, %arg0, %c0_i32_0 : i32, i32, i32
  }
  func.func @transform_1(%arg0: i32) -> (i32, i32) {
    %c0_i32 = arith.constant 0 : i32
    %c0_i32_0 = arith.constant 0 : i32
    %c0_i32_1 = arith.constant 0 : i32
    return %c0_i32, %c0_i32_0 : i32, i32
  }
  func.func @transform_2(%arg0: i32) -> (i32, i32) {
    %c0_i32 = arith.constant 0 : i32
    %c0_i32_0 = arith.constant 0 : i32
    %c0_i32_1 = arith.constant 0 : i32
    return %c0_i32, %c0_i32_0 : i32, i32
  }
  func.func @transform_3(%arg0: i32) -> (i32, i32) {
    %c0_i32 = arith.constant 0 : i32
    %c0_i32_0 = arith.constant 0 : i32
    return %arg0, %c0_i32 : i32, i32
  }
}

module attributes {stable_mosaic.version = 11 : i64} {
  func.func @_conv_pool_relu_kernel(%arg0: i32, %arg1: memref<4x80x288xbf16, #tpu.memory_space<vmem>>, %arg2: memref<288x128xbf16, #tpu.memory_space<vmem>>, %arg3: memref<1x128xf32, #tpu.memory_space<vmem>>, %arg4: memref<80x128xbf16, #tpu.memory_space<vmem>>) attributes {dimension_semantics = [#tpu.dimension_semantics<parallel>], iteration_bounds = array<i64: 1>, scalar_prefetch = 0 : i64, scratch_operands = 0 : i64, tpu.core_type = #tpu.core_type<tc>, window_params = [{transform_indices = @transform_0, window_bounds = array<i64: 4, 80, 288>}, {pipeline_mode = #tpu.pipeline_mode<synchronous>, transform_indices = @transform_1, window_bounds = array<i64: 288, 128>}, {pipeline_mode = #tpu.pipeline_mode<synchronous>, transform_indices = @transform_2, window_bounds = array<i64: 1, 128>}, {transform_indices = @transform_3, window_bounds = array<i64: 80, 128>}]} {
    %c0 = arith.constant 0 : index
    %c0_0 = arith.constant 0 : index
    %c0_1 = arith.constant 0 : index
    %0 = vector.load %arg1[%c0, %c0_0, %c0_1] : memref<4x80x288xbf16, #tpu.memory_space<vmem>>, vector<4x80x288xbf16>
    %1 = vector.shape_cast %0 : vector<4x80x288xbf16> to vector<320x288xbf16>
    %c0_2 = arith.constant 0 : index
    %c0_3 = arith.constant 0 : index
    %2 = vector.load %arg2[%c0_2, %c0_3] : memref<288x128xbf16, #tpu.memory_space<vmem>>, vector<288x128xbf16>
    %cst = arith.constant dense<0.000000e+00> : vector<320x128xf32>
    %3 = tpu.matmul %1, %2, %cst {dimension_numbers = #tpu.dot_dimension_numbers<[1], [0], [0], [1], [0, 0, 1, 1], [], []>} : vector<320x288xbf16>, vector<288x128xbf16>, vector<320x128xf32> -> vector<320x128xf32>
    %4 = vector.shape_cast %3 : vector<320x128xf32> to vector<4x80x128xf32>
    %cst_4 = arith.constant dense<0xFF800000> : vector<80x128xf32>
    %5 = vector.multi_reduction <maximumf>, %4, %cst_4 [0] : vector<4x80x128xf32> to vector<80x128xf32>
    %c0_5 = arith.constant 0 : index
    %c0_6 = arith.constant 0 : index
    %6 = vector.load %arg3[%c0_5, %c0_6] : memref<1x128xf32, #tpu.memory_space<vmem>>, vector<1x128xf32>
    %7 = vector.broadcast %6 : vector<1x128xf32> to vector<80x128xf32>
    %8 = arith.addf %5, %7 : vector<80x128xf32>
    %cst_7 = arith.constant 0.000000e+00 : f32
    %9 = vector.broadcast %cst_7 : f32 to vector<80x128xf32>
    %10 = arith.maximumf %8, %9 : vector<80x128xf32>
    %11 = arith.truncf %10 : vector<80x128xf32> to vector<80x128xbf16>
    %c0_8 = arith.constant 0 : index
    %c0_9 = arith.constant 0 : index
    %12 = vector.load %arg4[%c0_8, %c0_9] : memref<80x128xbf16, #tpu.memory_space<vmem>>, vector<80x128xbf16>
    tpu.vector_store %arg4[%c0_8, %c0_9], %11 {strides = array<i32>} : memref<80x128xbf16, #tpu.memory_space<vmem>>, vector<80x128xbf16>,
    return
  }
  func.func @transform_0(%arg0: i32) -> (i32, i32, i32) {
    %c0_i32 = arith.constant 0 : i32
    %c0_i32_0 = arith.constant 0 : i32
    %c0_i32_1 = arith.constant 0 : i32
    return %c0_i32, %arg0, %c0_i32_0 : i32, i32, i32
  }
  func.func @transform_1(%arg0: i32) -> (i32, i32) {
    %c0_i32 = arith.constant 0 : i32
    %c0_i32_0 = arith.constant 0 : i32
    %c0_i32_1 = arith.constant 0 : i32
    return %c0_i32, %c0_i32_0 : i32, i32
  }
  func.func @transform_2(%arg0: i32) -> (i32, i32) {
    %c0_i32 = arith.constant 0 : i32
    %c0_i32_0 = arith.constant 0 : i32
    %c0_i32_1 = arith.constant 0 : i32
    return %c0_i32, %c0_i32_0 : i32, i32
  }
  func.func @transform_3(%arg0: i32) -> (i32, i32) {
    %c0_i32 = arith.constant 0 : i32
    %c0_i32_0 = arith.constant 0 : i32
    return %arg0, %c0_i32 : i32, i32
  }
}

module attributes {stable_mosaic.version = 11 : i64} {
  func.func @_conv_pool_relu_kernel(%arg0: i32, %arg1: memref<4x32x576xbf16, #tpu.memory_space<vmem>>, %arg2: memref<576x128xbf16, #tpu.memory_space<vmem>>, %arg3: memref<1x128xf32, #tpu.memory_space<vmem>>, %arg4: memref<32x128xbf16, #tpu.memory_space<vmem>>) attributes {dimension_semantics = [#tpu.dimension_semantics<parallel>], iteration_bounds = array<i64: 1>, scalar_prefetch = 0 : i64, scratch_operands = 0 : i64, tpu.core_type = #tpu.core_type<tc>, window_params = [{transform_indices = @transform_0, window_bounds = array<i64: 4, 32, 576>}, {pipeline_mode = #tpu.pipeline_mode<synchronous>, transform_indices = @transform_1, window_bounds = array<i64: 576, 128>}, {pipeline_mode = #tpu.pipeline_mode<synchronous>, transform_indices = @transform_2, window_bounds = array<i64: 1, 128>}, {transform_indices = @transform_3, window_bounds = array<i64: 32, 128>}]} {
    %c0 = arith.constant 0 : index
    %c0_0 = arith.constant 0 : index
    %c0_1 = arith.constant 0 : index
    %0 = vector.load %arg1[%c0, %c0_0, %c0_1] : memref<4x32x576xbf16, #tpu.memory_space<vmem>>, vector<4x32x576xbf16>
    %1 = vector.shape_cast %0 : vector<4x32x576xbf16> to vector<128x576xbf16>
    %c0_2 = arith.constant 0 : index
    %c0_3 = arith.constant 0 : index
    %2 = vector.load %arg2[%c0_2, %c0_3] : memref<576x128xbf16, #tpu.memory_space<vmem>>, vector<576x128xbf16>
    %cst = arith.constant dense<0.000000e+00> : vector<128x128xf32>
    %3 = tpu.matmul %1, %2, %cst {dimension_numbers = #tpu.dot_dimension_numbers<[1], [0], [0], [1], [0, 0, 1, 1], [], []>} : vector<128x576xbf16>, vector<576x128xbf16>, vector<128x128xf32> -> vector<128x128xf32>
    %4 = vector.shape_cast %3 : vector<128x128xf32> to vector<4x32x128xf32>
    %cst_4 = arith.constant dense<0xFF800000> : vector<32x128xf32>
    %5 = vector.multi_reduction <maximumf>, %4, %cst_4 [0] : vector<4x32x128xf32> to vector<32x128xf32>
    %c0_5 = arith.constant 0 : index
    %c0_6 = arith.constant 0 : index
    %6 = vector.load %arg3[%c0_5, %c0_6] : memref<1x128xf32, #tpu.memory_space<vmem>>, vector<1x128xf32>
    %7 = vector.broadcast %6 : vector<1x128xf32> to vector<32x128xf32>
    %8 = arith.addf %5, %7 : vector<32x128xf32>
    %cst_7 = arith.constant 0.000000e+00 : f32
    %9 = vector.broadcast %cst_7 : f32 to vector<32x128xf32>
    %10 = arith.maximumf %8, %9 : vector<32x128xf32>
    %11 = arith.truncf %10 : vector<32x128xf32> to vector<32x128xbf16>
    %c0_8 = arith.constant 0 : index
    %c0_9 = arith.constant 0 : index
    %12 = vector.load %arg4[%c0_8, %c0_9] : memref<32x128xbf16, #tpu.memory_space<vmem>>, vector<32x128xbf16>
    tpu.vector_store %arg4[%c0_8, %c0_9], %11 {strides = array<i32>} : memref<32x128xbf16, #tpu.memory_space<vmem>>, vector<32x128xbf16>,
    return
  }
  func.func @transform_0(%arg0: i32) -> (i32, i32, i32) {
    %c0_i32 = arith.constant 0 : i32
    %c0_i32_0 = arith.constant 0 : i32
    %c0_i32_1 = arith.constant 0 : i32
    return %c0_i32, %arg0, %c0_i32_0 : i32, i32, i32
  }
  func.func @transform_1(%arg0: i32) -> (i32, i32) {
    %c0_i32 = arith.constant 0 : i32
    %c0_i32_0 = arith.constant 0 : i32
    %c0_i32_1 = arith.constant 0 : i32
    return %c0_i32, %c0_i32_0 : i32, i32
  }
  func.func @transform_2(%arg0: i32) -> (i32, i32) {
    %c0_i32 = arith.constant 0 : i32
    %c0_i32_0 = arith.constant 0 : i32
    %c0_i32_1 = arith.constant 0 : i32
    return %c0_i32, %c0_i32_0 : i32, i32
  }
  func.func @transform_3(%arg0: i32) -> (i32, i32) {
    %c0_i32 = arith.constant 0 : i32
    %c0_i32_0 = arith.constant 0 : i32
    return %arg0, %c0_i32 : i32, i32
  }
}

module attributes {stable_mosaic.version = 11 : i64} {
  func.func @_mlp_kernel(%arg0: i32, %arg1: memref<16x1152xbf16, #tpu.memory_space<vmem>>, %arg2: memref<1152x128xbf16, #tpu.memory_space<vmem>>, %arg3: memref<1x128xf32, #tpu.memory_space<vmem>>, %arg4: memref<128x128xbf16, #tpu.memory_space<vmem>>, %arg5: memref<1x128xf32, #tpu.memory_space<vmem>>, %arg6: memref<16x128xf32, #tpu.memory_space<vmem>>) attributes {dimension_semantics = [#tpu.dimension_semantics<parallel>], iteration_bounds = array<i64: 1>, scalar_prefetch = 0 : i64, scratch_operands = 0 : i64, tpu.core_type = #tpu.core_type<tc>, window_params = [{transform_indices = @transform_0, window_bounds = array<i64: 16, 1152>}, {pipeline_mode = #tpu.pipeline_mode<synchronous>, transform_indices = @transform_1, window_bounds = array<i64: 1152, 128>}, {pipeline_mode = #tpu.pipeline_mode<synchronous>, transform_indices = @transform_2, window_bounds = array<i64: 1, 128>}, {pipeline_mode = #tpu.pipeline_mode<synchronous>, transform_indices = @transform_3, window_bounds = array<i64: 128, 128>}, {pipeline_mode = #tpu.pipeline_mode<synchronous>, transform_indices = @transform_4, window_bounds = array<i64: 1, 128>}, {transform_indices = @transform_5, window_bounds = array<i64: 16, 128>}]} {
    %c0 = arith.constant 0 : index
    %c0_0 = arith.constant 0 : index
    %0 = vector.load %arg1[%c0, %c0_0] : memref<16x1152xbf16, #tpu.memory_space<vmem>>, vector<16x1152xbf16>
    %c0_1 = arith.constant 0 : index
    %c0_2 = arith.constant 0 : index
    %1 = vector.load %arg2[%c0_1, %c0_2] : memref<1152x128xbf16, #tpu.memory_space<vmem>>, vector<1152x128xbf16>
    %cst = arith.constant dense<0.000000e+00> : vector<16x128xf32>
    %2 = tpu.matmul %0, %1, %cst {dimension_numbers = #tpu.dot_dimension_numbers<[1], [0], [0], [1], [0, 0, 1, 1], [], []>} : vector<16x1152xbf16>, vector<1152x128xbf16>, vector<16x128xf32> -> vector<16x128xf32>
    %c0_3 = arith.constant 0 : index
    %c0_4 = arith.constant 0 : index
    %3 = vector.load %arg3[%c0_3, %c0_4] : memref<1x128xf32, #tpu.memory_space<vmem>>, vector<1x128xf32>
    %4 = vector.broadcast %3 : vector<1x128xf32> to vector<16x128xf32>
    %5 = arith.addf %2, %4 : vector<16x128xf32>
    %cst_5 = arith.constant 0.000000e+00 : f32
    %6 = vector.broadcast %cst_5 : f32 to vector<16x128xf32>
    %7 = arith.maximumf %5, %6 : vector<16x128xf32>
    %8 = arith.truncf %7 : vector<16x128xf32> to vector<16x128xbf16>
    %c0_6 = arith.constant 0 : index
    %c0_7 = arith.constant 0 : index
    %9 = vector.load %arg4[%c0_6, %c0_7] : memref<128x128xbf16, #tpu.memory_space<vmem>>, vector<128x128xbf16>
    %cst_8 = arith.constant dense<0.000000e+00> : vector<16x128xf32>
    %10 = tpu.matmul %8, %9, %cst_8 {dimension_numbers = #tpu.dot_dimension_numbers<[1], [0], [0], [1], [0, 0, 1, 1], [], []>} : vector<16x128xbf16>, vector<128x128xbf16>, vector<16x128xf32> -> vector<16x128xf32>
    %c0_9 = arith.constant 0 : index
    %c0_10 = arith.constant 0 : index
    %11 = vector.load %arg5[%c0_9, %c0_10] : memref<1x128xf32, #tpu.memory_space<vmem>>, vector<1x128xf32>
    %12 = vector.broadcast %11 : vector<1x128xf32> to vector<16x128xf32>
    %13 = arith.addf %10, %12 : vector<16x128xf32>
    %c0_11 = arith.constant 0 : index
    %c0_12 = arith.constant 0 : index
    %14 = vector.load %arg6[%c0_11, %c0_12] : memref<16x128xf32, #tpu.memory_space<vmem>>, vector<16x128xf32>
    tpu.vector_store %arg6[%c0_11, %c0_12], %13 {strides = array<i32>} : memref<16x128xf32, #tpu.memory_space<vmem>>, vector<16x128xf32>,
    return
  }
  func.func @transform_0(%arg0: i32) -> (i32, i32) {
    %c0_i32 = arith.constant 0 : i32
    %c0_i32_0 = arith.constant 0 : i32
    return %arg0, %c0_i32 : i32, i32
  }
  func.func @transform_1(%arg0: i32) -> (i32, i32) {
    %c0_i32 = arith.constant 0 : i32
    %c0_i32_0 = arith.constant 0 : i32
    %c0_i32_1 = arith.constant 0 : i32
    return %c0_i32, %c0_i32_0 : i32, i32
  }
  func.func @transform_2(%arg0: i32) -> (i32, i32) {
    %c0_i32 = arith.constant 0 : i32
    %c0_i32_0 = arith.constant 0 : i32
    %c0_i32_1 = arith.constant 0 : i32
    return %c0_i32, %c0_i32_0 : i32, i32
  }
  func.func @transform_3(%arg0: i32) -> (i32, i32) {
    %c0_i32 = arith.constant 0 : i32
    %c0_i32_0 = arith.constant 0 : i32
    %c0_i32_1 = arith.constant 0 : i32
    return %c0_i32, %c0_i32_0 : i32, i32
  }
  func.func @transform_4(%arg0: i32) -> (i32, i32) {
    %c0_i32 = arith.constant 0 : i32
    %c0_i32_0 = arith.constant 0 : i32
    %c0_i32_1 = arith.constant 0 : i32
    return %c0_i32, %c0_i32_0 : i32, i32
  }
  func.func @transform_5(%arg0: i32) -> (i32, i32) {
    %c0_i32 = arith.constant 0 : i32
    %c0_i32_0 = arith.constant 0 : i32
    return %arg0, %c0_i32 : i32, i32
  }
}

</mosaic_0001>

<bundles_post_ra>
// kernel: neural_net_forward.4
= control target key start
LH: loop header
LB: loop body
LE: loop exit
PB: predicated region body
PF: predicated region fallthrough
CT: control target
= control target key end

     0   :  { %vm751_vm0 = vcmask 1044480   ;;  %vm752_vm1 = vcmask 1045504   ;;  %v1944_v2 = vmov 65535   ;;  %vm534_vm2 = vcmask 220160   ;;  %s2357_s1 = inlined_call_operand.vmem [shape: bf16[27,128], index: 1, kind: input, shape index: {}]   ;;  %s2358_s0 = inlined_call_operand.vmem [shape: bf16[4,288,27], index: 0, kind: input, shape index: {}]   ;;  %s2359_s2 = inlined_call_operand.vmem [shape: f32[1,128], index: 2, kind: input, shape index: {}]   ;;  %s2360_s3 = inlined_call_operand.vmem [shape: bf16[288,128], index: 3, kind: output, shape index: {}]  }
   0x1   :  { %v1681_v0 = vld [vmem:[%s2357_s1 + $0x8] sm:$0xf]  ;;  %v1828_v1 = vld [vmem:[%s2357_s1 + $0x8] sm:$0x30]  ;;  %v753_v3 = vsel %vm751_vm0, 4294967295, %v1944_v2  ;;  %v1827_v7 = vld [vmem:[%s2357_s1] sm:$0xff] }
   0x2   :  { %v1682_v4 = vor.u32 %v1828_v1, %v1681_v0  ;;  %v754_v5 = vsel %vm752_vm1, %v753_v3, 0  ;;  %v1755_v8 = vld [vmem:[%s2358_s0] sm:$0xff]  ;;  %v1773_v9 = vld [vmem:[%s2358_s0 + $0x90] sm:$0xff]  ;;  %v1756_v12 = vld [vmem:[%s2358_s0 + $0x8] sm:$0xff] }
   0x3   :  { %v1791_v10 = vld [vmem:[%s2358_s0 + $0x120] sm:$0xff]  ;;  %v1809_v11 = vld [vmem:[%s2358_s0 + $0x1b0] sm:$0xff]  ;;  %v1774_v13 = vld [vmem:[%s2358_s0 + $0x98] sm:$0xff] }
   0x4   :  { %v756_v6 = vand.u32 %v1682_v4, %v754_v5  ;;  %v1792_v14 = vld [vmem:[%s2358_s0 + $0x128] sm:$0xff]  ;;  %v1810_v15 = vld [vmem:[%s2358_s0 + $0x1b8] sm:$0xff]  ;;  %v1757_v16 = vld [vmem:[%s2358_s0 + $0x10] sm:$0xff] }
   0x5   :  { %v1775_v17 = vld [vmem:[%s2358_s0 + $0xa0] sm:$0xff]  ;;  %v1793_v18 = vld [vmem:[%s2358_s0 + $0x130] sm:$0xff]  ;;  %v1758_v20 = vld [vmem:[%s2358_s0 + $0x18] sm:$0xff] }
   0x6   :  { %764 = vmatpush.bf16.msra.mxu0 %v756_v6  ;;  %1936 = vmatpush.bf16.msra.mxu1 %v756_v6  ;;  %v1811_v19 = vld [vmem:[%s2358_s0 + $0x1c0] sm:$0xff]  ;;  %v1776_v21 = vld [vmem:[%s2358_s0 + $0xa8] sm:$0xff]  ;;  %v1794_v22 = vld [vmem:[%s2358_s0 + $0x138] sm:$0xff] }
   0x7   :  { %1937 = vmatpush.bf16.msra.mxu2 %v756_v6  ;;  %1938 = vmatpush.bf16.msra.mxu3 %v756_v6  ;;  %v1812_v23 = vld [vmem:[%s2358_s0 + $0x1c8] sm:$0xff]  ;;  %v1759_v24 = vld [vmem:[%s2358_s0 + $0x20] sm:$0xff]  ;;  %v1777_v25 = vld [vmem:[%s2358_s0 + $0xb0] sm:$0xff] }
   0x8   :  { %v1795_v26 = vld [vmem:[%s2358_s0 + $0x140] sm:$0xff]  ;;  %v1813_v27 = vld [vmem:[%s2358_s0 + $0x1d0] sm:$0xff]  ;;  %v1760_v28 = vld [vmem:[%s2358_s0 + $0x28] sm:$0xff] }
   0x9   :  { %v1778_v29 = vld [vmem:[%s2358_s0 + $0xb8] sm:$0xff]  ;;  %v1796_v30 = vld [vmem:[%s2358_s0 + $0x148] sm:$0xff]  ;;  %v1761_v32 = vld [vmem:[%s2358_s0 + $0x30] sm:$0xff] }
   0xa   :  { %765 = vmatpush.bf16.msra.mxu0 %v1827_v7  ;;  %1939 = vmatpush.bf16.msra.mxu1 %v1827_v7  ;;  %v1814_v31 = vld [vmem:[%s2358_s0 + $0x1d8] sm:$0xff]  ;;  %v1779_v33 = vld [vmem:[%s2358_s0 + $0xc0] sm:$0xff]  ;;  %v1797_v34 = vld [vmem:[%s2358_s0 + $0x150] sm:$0xff] }
   0xb   :  { %1940 = vmatpush.bf16.msra.mxu2 %v1827_v7  ;;  %1941 = vmatpush.bf16.msra.mxu3 %v1827_v7  ;;  %v1815_v35 = vld [vmem:[%s2358_s0 + $0x1e0] sm:$0xff]  ;;  %v1762_v36 = vld [vmem:[%s2358_s0 + $0x38] sm:$0xff]  ;;  %v1780_v37 = vld [vmem:[%s2358_s0 + $0xc8] sm:$0xff] }
   0xc   :  { %v1798_v38 = vld [vmem:[%s2358_s0 + $0x158] sm:$0xff]  ;;  %v1816_v39 = vld [vmem:[%s2358_s0 + $0x1e8] sm:$0xff]  ;;  %v1763_v40 = vld [vmem:[%s2358_s0 + $0x40] sm:$0xff] }
   0xd   :  { %1683 = vmatmul.msk.bf16.vlgmr.msra.gmra.mxu0 %vm534_vm2, %v1755_v8  ;;  %1701 = vmatmul.msk.bf16.vlgmr.msra.gmra.mxu1 %vm534_vm2, %v1773_v9  ;;  %v1781_v41 = vld [vmem:[%s2358_s0 + $0xd0] sm:$0xff]  ;;  %v1799_v44 = vld [vmem:[%s2358_s0 + $0x160] sm:$0xff]  ;;  %v1764_v57 = vld [vmem:[%s2358_s0 + $0x48] sm:$0xff] }
   0xe   :  { %1719 = vmatmul.msk.bf16.vlgmr.msra.gmra.mxu2 %vm534_vm2, %v1791_v10  ;;  %1737 = vmatmul.msk.bf16.vlgmr.msra.gmra.mxu3 %vm534_vm2, %v1809_v11  ;;  %v1817_v45 = vld [vmem:[%s2358_s0 + $0x1f0] sm:$0xff]  ;;  %v2121_v53 = vld [vmem:[%s2359_s2] ss:$0 sm:$0xff]  ;;  %v1782_v58 = vld [vmem:[%s2358_s0 + $0xd8] sm:$0xff] }
   0xf   :  { %v1800_v62 = vld [vmem:[%s2358_s0 + $0x168] sm:$0xff]  ;;  %v1818_v63 = vld [vmem:[%s2358_s0 + $0x1f8] sm:$0xff] }
  0x1d   :  { %1684 = vmatmul.msk.bf16.gmra.mxu0 %vm534_vm2, %v1756_v12  ;;  %1702 = vmatmul.msk.bf16.gmra.mxu1 %vm534_vm2, %v1774_v13 }
  0x1e   :  { %1720 = vmatmul.msk.bf16.gmra.mxu2 %vm534_vm2, %v1792_v14  ;;  %1738 = vmatmul.msk.bf16.gmra.mxu3 %vm534_vm2, %v1810_v15 }
  0x2d   :  { %1685 = vmatmul.msk.bf16.gmra.mxu0 %vm534_vm2, %v1757_v16  ;;  %1703 = vmatmul.msk.bf16.gmra.mxu1 %vm534_vm2, %v1775_v17  ;;  %v1765_v16 = vld [vmem:[%s2358_s0 + $0x50] sm:$0xff]  ;;  %v1783_v17 = vld [vmem:[%s2358_s0 + $0xe0] sm:$0xff] }
  0x2e   :  { %1721 = vmatmul.msk.bf16.gmra.mxu2 %vm534_vm2, %v1793_v18  ;;  %1739 = vmatmul.msk.bf16.gmra.mxu3 %vm534_vm2, %v1811_v19 }
  0x3d   :  { %1686 = vmatmul.msk.bf16.gmra.mxu0 %vm534_vm2, %v1758_v20  ;;  %1704 = vmatmul.msk.bf16.gmra.mxu1 %vm534_vm2, %v1776_v21  ;;  %v1801_v21 = vld [vmem:[%s2358_s0 + $0x170] sm:$0xff] }
  0x3e   :  { %1722 = vmatmul.msk.bf16.gmra.mxu2 %vm534_vm2, %v1794_v22  ;;  %1740 = vmatmul.msk.bf16.gmra.mxu3 %vm534_vm2, %v1812_v23  ;;  %v1819_v22 = vld [vmem:[%s2358_s0 + $0x200] sm:$0xff] }
  0x4d   :  { %1687 = vmatmul.msk.bf16.gmra.mxu0 %vm534_vm2, %v1759_v24  ;;  %1705 = vmatmul.msk.bf16.gmra.mxu1 %vm534_vm2, %v1777_v25 }
  0x4e   :  { %1723 = vmatmul.msk.bf16.gmra.mxu2 %vm534_vm2, %v1795_v26  ;;  %1741 = vmatmul.msk.bf16.gmra.mxu3 %vm534_vm2, %v1813_v27 }
  0x5d   :  { %1688 = vmatmul.msk.bf16.gmra.mxu0 %vm534_vm2, %v1760_v28  ;;  %1706 = vmatmul.msk.bf16.gmra.mxu1 %vm534_vm2, %v1778_v29 }
  0x5e   :  { %1724 = vmatmul.msk.bf16.gmra.mxu2 %vm534_vm2, %v1796_v30  ;;  %1742 = vmatmul.msk.bf16.gmra.mxu3 %vm534_vm2, %v1814_v31 }
  0x6d   :  { %1689 = vmatmul.msk.bf16.gmra.mxu0 %vm534_vm2, %v1761_v32  ;;  %1707 = vmatmul.msk.bf16.gmra.mxu1 %vm534_vm2, %v1779_v33 }
  0x6e   :  { %1725 = vmatmul.msk.bf16.gmra.mxu2 %vm534_vm2, %v1797_v34  ;;  %1743 = vmatmul.msk.bf16.gmra.mxu3 %vm534_vm2, %v1815_v35 }
  0x7d   :  { %1690 = vmatmul.msk.bf16.gmra.mxu0 %vm534_vm2, %v1762_v36  ;;  %1708 = vmatmul.msk.bf16.gmra.mxu1 %vm534_vm2, %v1780_v37 }
  0x7e   :  { %1726 = vmatmul.msk.bf16.gmra.mxu2 %vm534_vm2, %v1798_v38  ;;  %1744 = vmatmul.msk.bf16.gmra.mxu3 %vm534_vm2, %v1816_v39  ;;  %v1766_v39 = vld [vmem:[%s2358_s0 + $0x58] sm:$0xff] }
  0x8a   :  { %v767_v42 = vpop.f32.mrf.mxu0  ;;  %v857_v43 = vpop.f32.mrf.mxu1 }
  0x8b   :  { %v1127_v46 = vmax.f32 %v767_v42, %v857_v43 }
  0x8d   :  { %1691 = vmatmul.msk.bf16.gmra.mxu0 %vm534_vm2, %v1763_v40  ;;  %1709 = vmatmul.msk.bf16.gmra.mxu1 %vm534_vm2, %v1781_v41  ;;  %v1784_v40 = vld [vmem:[%s2358_s0 + $0xe8] sm:$0xff] }
  0x8e   :  { %1727 = vmatmul.msk.bf16.gmra.mxu2 %vm534_vm2, %v1799_v44  ;;  %1745 = vmatmul.msk.bf16.gmra.mxu3 %vm534_vm2, %v1817_v45  ;;  %v1802_v44 = vld [vmem:[%s2358_s0 + $0x178] sm:$0xff]  ;;  %v1820_v45 = vld [vmem:[%s2358_s0 + $0x208] sm:$0xff] }
  0x91   :  { %v947_v47 = vpop.f32.mrf.mxu2  ;;  %v1037_v48 = vpop.f32.mrf.mxu3 }
  0x92   :  { %v769_v49 = vpop.f32.mrf.mxu0  ;;  %v859_v50 = vpop.f32.mrf.mxu1  ;;  %v1128_v51 = vmax.f32 %v1127_v46, %v947_v47 }
  0x93   :  { %v1130_v54 = vmax.f32 %v769_v49, %v859_v50 }
  0x94   :  { %v1129_v52 = vmax.f32 %v1128_v51, %v1037_v48 }
  0x96   :  { %v1239_v0 = vadd.f32 %v2121_v53, %v1129_v52 }
  0x98   :  { %v1275_v3 = vmax.f32 %v1239_v0, 0.0  ;;  %v1785_v0 = vld [vmem:[%s2358_s0 + $0xf0] sm:$0xff] }
  0x99   :  { %v949_v55 = vpop.f32.mrf.mxu2  ;;  %v1039_v56 = vpop.f32.mrf.mxu3 }
  0x9a   :  { %v1131_v59 = vmax.f32 %v1130_v54, %v949_v55  ;;  %v772_v60 = vpop.f32.mrf.mxu0  ;;  %v862_v61 = vpop.f32.mrf.mxu1 }
  0x9b   :  { %v1133_v5 = vmax.f32 %v772_v60, %v862_v61 }
  0x9c   :  { %v1132_v1 = vmax.f32 %v1131_v59, %v1039_v56 }
  0x9d   :  { %1692 = vmatmul.msk.bf16.gmra.mxu0 %vm534_vm2, %v1764_v57  ;;  %1710 = vmatmul.msk.bf16.gmra.mxu1 %vm534_vm2, %v1782_v58 }
  0x9e   :  { %v1240_v2 = vadd.f32 %v2121_v53, %v1132_v1  ;;  %1728 = vmatmul.msk.bf16.gmra.mxu2 %vm534_vm2, %v1800_v62  ;;  %1746 = vmatmul.msk.bf16.gmra.mxu3 %vm534_vm2, %v1818_v63  ;;  %v1767_v63 = vld [vmem:[%s2358_s0 + $0x60] sm:$0xff] }
  0xa0   :  { %v1276_v4 = vmax.f32 %v1240_v2, 0.0 }
  0xa1   :  { %v952_v6 = vpop.f32.mrf.mxu2  ;;  %v1042_v7 = vpop.f32.mrf.mxu3 }
  0xa2   :  { %v1832_v8 = vpack.c.bf16 %v1276_v4, %v1275_v3  ;;  %v774_v9 = vpop.f32.mrf.mxu0  ;;  %v864_v10 = vpop.f32.mrf.mxu1  ;;  %v1134_v11 = vmax.f32 %v1133_v5, %v952_v6  ;;  %v1803_v4 = vld [vmem:[%s2358_s0 + $0x180] sm:$0xff]  ;;  %v1821_v5 = vld [vmem:[%s2358_s0 + $0x210] sm:$0xff] }
  0xa3   :  { %v1136_v13 = vmax.f32 %v774_v9, %v864_v10 }
  0xa4   :  { %1833 = vst [vmem:[%s2360_s3] sm:$0xff] %v1832_v8   ;;  %v1135_v12 = vmax.f32 %v1134_v11, %v1042_v7 }
  0xa6   :  { %v1241_v23 = vadd.f32 %v2121_v53, %v1135_v12 }
  0xa8   :  { %v1277_v26 = vmax.f32 %v1241_v23, 0.0  ;;  %v1786_v23 = vld [vmem:[%s2358_s0 + $0xf8] sm:$0xff] }
  0xa9   :  { %v954_v14 = vpop.f32.mrf.mxu2  ;;  %v1044_v15 = vpop.f32.mrf.mxu3 }
  0xaa   :  { %v1137_v18 = vmax.f32 %v1136_v13, %v954_v14  ;;  %v777_v19 = vpop.f32.mrf.mxu0  ;;  %v867_v20 = vpop.f32.mrf.mxu1 }
  0xab   :  { %v1139_v28 = vmax.f32 %v777_v19, %v867_v20 }
  0xac   :  { %v1138_v24 = vmax.f32 %v1137_v18, %v1044_v15 }
  0xad   :  { %1693 = vmatmul.msk.bf16.gmra.mxu0 %vm534_vm2, %v1765_v16  ;;  %1711 = vmatmul.msk.bf16.gmra.mxu1 %vm534_vm2, %v1783_v17 }
  0xae   :  { %v1242_v25 = vadd.f32 %v2121_v53, %v1138_v24  ;;  %1729 = vmatmul.msk.bf16.gmra.mxu2 %vm534_vm2, %v1801_v21  ;;  %1747 = vmatmul.msk.bf16.gmra.mxu3 %vm534_vm2, %v1819_v22  ;;  %v1768_v22 = vld [vmem:[%s2358_s0 + $0x68] sm:$0xff] }
  0xb0   :  { %v1278_v27 = vmax.f32 %v1242_v25, 0.0 }
  0xb1   :  { %v957_v29 = vpop.f32.mrf.mxu2  ;;  %v1047_v30 = vpop.f32.mrf.mxu3 }
  0xb2   :  { %v1837_v31 = vpack.c.bf16 %v1278_v27, %v1277_v26  ;;  %v779_v32 = vpop.f32.mrf.mxu0  ;;  %v869_v33 = vpop.f32.mrf.mxu1  ;;  %v1140_v34 = vmax.f32 %v1139_v28, %v957_v29  ;;  %v1804_v27 = vld [vmem:[%s2358_s0 + $0x188] sm:$0xff]  ;;  %v1822_v28 = vld [vmem:[%s2358_s0 + $0x218] sm:$0xff] }
  0xb3   :  { %v1142_v36 = vmax.f32 %v779_v32, %v869_v33 }
  0xb4   :  { %1919 = vst [vmem:[%s2360_s3 + $0x8] sm:$0xff] %v1837_v31   ;;  %v1141_v35 = vmax.f32 %v1140_v34, %v1047_v30 }
  0xb6   :  { %v1243_v46 = vadd.f32 %v2121_v53, %v1141_v35 }
  0xb8   :  { %v1279_v49 = vmax.f32 %v1243_v46, 0.0  ;;  %v1787_v46 = vld [vmem:[%s2358_s0 + $0x100] sm:$0xff] }
  0xb9   :  { %v959_v37 = vpop.f32.mrf.mxu2  ;;  %v1049_v38 = vpop.f32.mrf.mxu3 }
  0xba   :  { %v1143_v41 = vmax.f32 %v1142_v36, %v959_v37  ;;  %v782_v42 = vpop.f32.mrf.mxu0  ;;  %v872_v43 = vpop.f32.mrf.mxu1 }
  0xbb   :  { %v1145_v51 = vmax.f32 %v782_v42, %v872_v43 }
  0xbc   :  { %v1144_v47 = vmax.f32 %v1143_v41, %v1049_v38 }
  0xbd   :  { %1694 = vmatmul.msk.bf16.gmra.mxu0 %vm534_vm2, %v1766_v39  ;;  %1712 = vmatmul.msk.bf16.gmra.mxu1 %vm534_vm2, %v1784_v40 }
  0xbe   :  { %v1244_v48 = vadd.f32 %v2121_v53, %v1144_v47  ;;  %1730 = vmatmul.msk.bf16.gmra.mxu2 %vm534_vm2, %v1802_v44  ;;  %1748 = vmatmul.msk.bf16.gmra.mxu3 %vm534_vm2, %v1820_v45  ;;  %v1769_v45 = vld [vmem:[%s2358_s0 + $0x70] sm:$0xff] }
  0xc0   :  { %v1280_v50 = vmax.f32 %v1244_v48, 0.0 }
  0xc1   :  { %v962_v52 = vpop.f32.mrf.mxu2  ;;  %v1052_v54 = vpop.f32.mrf.mxu3 }
  0xc2   :  { %v1842_v55 = vpack.c.bf16 %v1280_v50, %v1279_v49  ;;  %v784_v56 = vpop.f32.mrf.mxu0  ;;  %v874_v57 = vpop.f32.mrf.mxu1  ;;  %v1146_v58 = vmax.f32 %v1145_v51, %v962_v52  ;;  %v1805_v50 = vld [vmem:[%s2358_s0 + $0x190] sm:$0xff]  ;;  %v1823_v51 = vld [vmem:[%s2358_s0 + $0x220] sm:$0xff] }
  0xc3   :  { %v1148_v60 = vmax.f32 %v784_v56, %v874_v57 }
  0xc4   :  { %1920 = vst [vmem:[%s2360_s3 + $0x10] sm:$0xff] %v1842_v55   ;;  %v1147_v59 = vmax.f32 %v1146_v58, %v1052_v54 }
  0xc6   :  { %v1245_v6 = vadd.f32 %v2121_v53, %v1147_v59 }
  0xc8   :  { %v1281_v9 = vmax.f32 %v1245_v6, 0.0  ;;  %v1788_v6 = vld [vmem:[%s2358_s0 + $0x108] sm:$0xff] }
  0xc9   :  { %v964_v61 = vpop.f32.mrf.mxu2  ;;  %v1054_v62 = vpop.f32.mrf.mxu3 }
  0xca   :  { %v1149_v1 = vmax.f32 %v1148_v60, %v964_v61  ;;  %v787_v2 = vpop.f32.mrf.mxu0  ;;  %v877_v3 = vpop.f32.mrf.mxu1 }
  0xcb   :  { %v1151_v11 = vmax.f32 %v787_v2, %v877_v3 }
  0xcc   :  { %v1150_v7 = vmax.f32 %v1149_v1, %v1054_v62 }
  0xcd   :  { %1695 = vmatmul.msk.bf16.gmra.mxu0 %vm534_vm2, %v1767_v63  ;;  %1713 = vmatmul.msk.bf16.gmra.mxu1 %vm534_vm2, %v1785_v0 }
  0xce   :  { %v1246_v8 = vadd.f32 %v2121_v53, %v1150_v7  ;;  %1731 = vmatmul.msk.bf16.gmra.mxu2 %vm534_vm2, %v1803_v4  ;;  %1749 = vmatmul.msk.bf16.gmra.mxu3 %vm534_vm2, %v1821_v5  ;;  %v1770_v5 = vld [vmem:[%s2358_s0 + $0x78] sm:$0xff] }
  0xd0   :  { %v1282_v10 = vmax.f32 %v1246_v8, 0.0 }
  0xd1   :  { %v967_v12 = vpop.f32.mrf.mxu2  ;;  %v1057_v13 = vpop.f32.mrf.mxu3 }
  0xd2   :  { %v1847_v14 = vpack.c.bf16 %v1282_v10, %v1281_v9  ;;  %v789_v15 = vpop.f32.mrf.mxu0  ;;  %v879_v16 = vpop.f32.mrf.mxu1  ;;  %v1152_v17 = vmax.f32 %v1151_v11, %v967_v12  ;;  %v1806_v10 = vld [vmem:[%s2358_s0 + $0x198] sm:$0xff]  ;;  %v1824_v11 = vld [vmem:[%s2358_s0 + $0x228] sm:$0xff] }
  0xd3   :  { %v1154_v19 = vmax.f32 %v789_v15, %v879_v16 }
  0xd4   :  { %1921 = vst [vmem:[%s2360_s3 + $0x18] sm:$0xff] %v1847_v14   ;;  %v1153_v18 = vmax.f32 %v1152_v17, %v1057_v13 }
  0xd6   :  { %v1247_v29 = vadd.f32 %v2121_v53, %v1153_v18 }
  0xd8   :  { %v1283_v32 = vmax.f32 %v1247_v29, 0.0  ;;  %v1789_v29 = vld [vmem:[%s2358_s0 + $0x110] sm:$0xff] }
  0xd9   :  { %v969_v20 = vpop.f32.mrf.mxu2  ;;  %v1059_v21 = vpop.f32.mrf.mxu3 }
  0xda   :  { %v1155_v24 = vmax.f32 %v1154_v19, %v969_v20  ;;  %v792_v25 = vpop.f32.mrf.mxu0  ;;  %v882_v26 = vpop.f32.mrf.mxu1 }
  0xdb   :  { %v1157_v34 = vmax.f32 %v792_v25, %v882_v26 }
  0xdc   :  { %v1156_v30 = vmax.f32 %v1155_v24, %v1059_v21 }
  0xdd   :  { %1696 = vmatmul.msk.bf16.gmra.mxu0 %vm534_vm2, %v1768_v22  ;;  %1714 = vmatmul.msk.bf16.gmra.mxu1 %vm534_vm2, %v1786_v23 }
  0xde   :  { %v1248_v31 = vadd.f32 %v2121_v53, %v1156_v30  ;;  %1732 = vmatmul.msk.bf16.gmra.mxu2 %vm534_vm2, %v1804_v27  ;;  %1750 = vmatmul.msk.bf16.gmra.mxu3 %vm534_vm2, %v1822_v28  ;;  %v1771_v28 = vld [vmem:[%s2358_s0 + $0x80] sm:$0xff] }
  0xe0   :  { %v1284_v33 = vmax.f32 %v1248_v31, 0.0 }
  0xe1   :  { %v972_v35 = vpop.f32.mrf.mxu2  ;;  %v1062_v36 = vpop.f32.mrf.mxu3 }
  0xe2   :  { %v1852_v37 = vpack.c.bf16 %v1284_v33, %v1283_v32  ;;  %v794_v38 = vpop.f32.mrf.mxu0  ;;  %v884_v39 = vpop.f32.mrf.mxu1  ;;  %v1158_v40 = vmax.f32 %v1157_v34, %v972_v35  ;;  %v1807_v33 = vld [vmem:[%s2358_s0 + $0x1a0] sm:$0xff]  ;;  %v1825_v34 = vld [vmem:[%s2358_s0 + $0x230] sm:$0xff] }
  0xe3   :  { %v1160_v42 = vmax.f32 %v794_v38, %v884_v39 }
  0xe4   :  { %1922 = vst [vmem:[%s2360_s3 + $0x20] sm:$0xff] %v1852_v37   ;;  %v1159_v41 = vmax.f32 %v1158_v40, %v1062_v36 }
  0xe6   :  { %v1249_v52 = vadd.f32 %v2121_v53, %v1159_v41 }
  0xe8   :  { %v1285_v56 = vmax.f32 %v1249_v52, 0.0  ;;  %v1790_v52 = vld [vmem:[%s2358_s0 + $0x118] sm:$0xff] }
  0xe9   :  { %v974_v43 = vpop.f32.mrf.mxu2  ;;  %v1064_v44 = vpop.f32.mrf.mxu3 }
  0xea   :  { %v1161_v47 = vmax.f32 %v1160_v42, %v974_v43  ;;  %v797_v48 = vpop.f32.mrf.mxu0  ;;  %v887_v49 = vpop.f32.mrf.mxu1 }
  0xeb   :  { %v1163_v58 = vmax.f32 %v797_v48, %v887_v49 }
  0xec   :  { %v1162_v54 = vmax.f32 %v1161_v47, %v1064_v44 }
  0xed   :  { %1697 = vmatmul.msk.bf16.gmra.mxu0 %vm534_vm2, %v1769_v45  ;;  %1715 = vmatmul.msk.bf16.gmra.mxu1 %vm534_vm2, %v1787_v46 }
  0xee   :  { %v1250_v55 = vadd.f32 %v2121_v53, %v1162_v54  ;;  %1733 = vmatmul.msk.bf16.gmra.mxu2 %vm534_vm2, %v1805_v50  ;;  %1751 = vmatmul.msk.bf16.gmra.mxu3 %vm534_vm2, %v1823_v51  ;;  %v1772_v51 = vld [vmem:[%s2358_s0 + $0x88] sm:$0xff] }
  0xf0   :  { %v1286_v57 = vmax.f32 %v1250_v55, 0.0 }
  0xf1   :  { %v977_v59 = vpop.f32.mrf.mxu2  ;;  %v1067_v60 = vpop.f32.mrf.mxu3 }
  0xf2   :  { %v1857_v61 = vpack.c.bf16 %v1286_v57, %v1285_v56  ;;  %v799_v62 = vpop.f32.mrf.mxu0  ;;  %v889_v63 = vpop.f32.mrf.mxu1  ;;  %v1164_v0 = vmax.f32 %v1163_v58, %v977_v59  ;;  %v1808_v57 = vld [vmem:[%s2358_s0 + $0x1a8] sm:$0xff]  ;;  %v1826_v58 = vld [vmem:[%s2358_s0 + $0x238] sm:$0xff] }
  0xf3   :  { %v1166_v2 = vmax.f32 %v799_v62, %v889_v63 }
  0xf4   :  { %1923 = vst [vmem:[%s2360_s3 + $0x28] sm:$0xff] %v1857_v61   ;;  %v1165_v1 = vmax.f32 %v1164_v0, %v1067_v60 }
  0xf6   :  { %v1251_v12 = vadd.f32 %v2121_v53, %v1165_v1 }
  0xf8   :  { %v1287_v15 = vmax.f32 %v1251_v12, 0.0 }
  0xf9   :  { %v979_v3 = vpop.f32.mrf.mxu2  ;;  %v1069_v4 = vpop.f32.mrf.mxu3 }
  0xfa   :  { %v1167_v7 = vmax.f32 %v1166_v2, %v979_v3  ;;  %v802_v8 = vpop.f32.mrf.mxu0  ;;  %v892_v9 = vpop.f32.mrf.mxu1 }
  0xfb   :  { %v1169_v17 = vmax.f32 %v802_v8, %v892_v9 }
  0xfc   :  { %v1168_v13 = vmax.f32 %v1167_v7, %v1069_v4 }
  0xfd   :  { %1698 = vmatmul.msk.bf16.gmra.mxu0 %vm534_vm2, %v1770_v5  ;;  %1716 = vmatmul.msk.bf16.gmra.mxu1 %vm534_vm2, %v1788_v6 }
  0xfe   :  { %v1252_v14 = vadd.f32 %v2121_v53, %v1168_v13  ;;  %1734 = vmatmul.msk.bf16.gmra.mxu2 %vm534_vm2, %v1806_v10  ;;  %1752 = vmatmul.msk.bf16.gmra.mxu3 %vm534_vm2, %v1824_v11 }
 0x100   :  { %v1288_v16 = vmax.f32 %v1252_v14, 0.0 }
 0x101   :  { %v982_v18 = vpop.f32.mrf.mxu2  ;;  %v1072_v19 = vpop.f32.mrf.mxu3 }
 0x102   :  { %v1862_v20 = vpack.c.bf16 %v1288_v16, %v1287_v15  ;;  %v804_v21 = vpop.f32.mrf.mxu0  ;;  %v894_v22 = vpop.f32.mrf.mxu1  ;;  %v1170_v23 = vmax.f32 %v1169_v17, %v982_v18 }
 0x103   :  { %v1172_v25 = vmax.f32 %v804_v21, %v894_v22 }
 0x104   :  { %1924 = vst [vmem:[%s2360_s3 + $0x30] sm:$0xff] %v1862_v20   ;;  %v1171_v24 = vmax.f32 %v1170_v23, %v1072_v19 }
 0x106   :  { %v1253_v35 = vadd.f32 %v2121_v53, %v1171_v24 }
 0x108   :  { %v1289_v38 = vmax.f32 %v1253_v35, 0.0 }
 0x109   :  { %v984_v26 = vpop.f32.mrf.mxu2  ;;  %v1074_v27 = vpop.f32.mrf.mxu3 }
 0x10a   :  { %v1173_v30 = vmax.f32 %v1172_v25, %v984_v26  ;;  %v807_v31 = vpop.f32.mrf.mxu0  ;;  %v897_v32 = vpop.f32.mrf.mxu1 }
 0x10b   :  { %v1175_v40 = vmax.f32 %v807_v31, %v897_v32 }
 0x10c   :  { %v1174_v36 = vmax.f32 %v1173_v30, %v1074_v27 }
 0x10d   :  { %1699 = vmatmul.msk.bf16.gmra.mxu0 %vm534_vm2, %v1771_v28  ;;  %1717 = vmatmul.msk.bf16.gmra.mxu1 %vm534_vm2, %v1789_v29 }
 0x10e   :  { %v1254_v37 = vadd.f32 %v2121_v53, %v1174_v36  ;;  %1735 = vmatmul.msk.bf16.gmra.mxu2 %vm534_vm2, %v1807_v33  ;;  %1753 = vmatmul.msk.bf16.gmra.mxu3 %vm534_vm2, %v1825_v34 }
 0x110   :  { %v1290_v39 = vmax.f32 %v1254_v37, 0.0 }
 0x111   :  { %v987_v41 = vpop.f32.mrf.mxu2  ;;  %v1077_v42 = vpop.f32.mrf.mxu3 }
 0x112   :  { %v1867_v43 = vpack.c.bf16 %v1290_v39, %v1289_v38  ;;  %v809_v44 = vpop.f32.mrf.mxu0  ;;  %v899_v45 = vpop.f32.mrf.mxu1  ;;  %v1176_v46 = vmax.f32 %v1175_v40, %v987_v41 }
 0x113   :  { %v1178_v48 = vmax.f32 %v809_v44, %v899_v45 }
 0x114   :  { %1925 = vst [vmem:[%s2360_s3 + $0x38] sm:$0xff] %v1867_v43   ;;  %v1177_v47 = vmax.f32 %v1176_v46, %v1077_v42 }
 0x116   :  { %v1255_v59 = vadd.f32 %v2121_v53, %v1177_v47 }
 0x118   :  { %v1291_v62 = vmax.f32 %v1255_v59, 0.0 }
 0x119   :  { %v989_v49 = vpop.f32.mrf.mxu2  ;;  %v1079_v50 = vpop.f32.mrf.mxu3 }
 0x11a   :  { %v1179_v54 = vmax.f32 %v1178_v48, %v989_v49  ;;  %v812_v55 = vpop.f32.mrf.mxu0  ;;  %v902_v56 = vpop.f32.mrf.mxu1 }
 0x11b   :  { %v1181_v0 = vmax.f32 %v812_v55, %v902_v56 }
 0x11c   :  { %v1180_v60 = vmax.f32 %v1179_v54, %v1079_v50 }
 0x11d   :  { %1700 = vmatmul.msk.bf16.gmra.mxu0 %vm534_vm2, %v1772_v51  ;;  %1718 = vmatmul.msk.bf16.gmra.mxu1 %vm534_vm2, %v1790_v52 }
 0x11e   :  { %v1256_v61 = vadd.f32 %v2121_v53, %v1180_v60  ;;  %1736 = vmatmul.msk.bf16.gmra.mxu2 %vm534_vm2, %v1808_v57  ;;  %1754 = vmatmul.msk.bf16.gmra.mxu3 %vm534_vm2, %v1826_v58 }
 0x120   :  { %v1292_v63 = vmax.f32 %v1256_v61, 0.0 }
 0x121   :  { %v992_v1 = vpop.f32.mrf.mxu2  ;;  %v1082_v2 = vpop.f32.mrf.mxu3 }
 0x122   :  { %v1872_v3 = vpack.c.bf16 %v1292_v63, %v1291_v62  ;;  %v814_v4 = vpop.f32.mrf.mxu0  ;;  %v904_v5 = vpop.f32.mrf.mxu1  ;;  %v1182_v6 = vmax.f32 %v1181_v0, %v992_v1 }
 0x123   :  { %v1184_v8 = vmax.f32 %v814_v4, %v904_v5 }
 0x124   :  { %1926 = vst [vmem:[%s2360_s3 + $0x40] sm:$0xff] %v1872_v3   ;;  %v1183_v7 = vmax.f32 %v1182_v6, %v1082_v2 }
 0x126   :  { %v1257_v14 = vadd.f32 %v2121_v53, %v1183_v7 }
 0x128   :  { %v1293_v17 = vmax.f32 %v1257_v14, 0.0 }
 0x129   :  { %v994_v9 = vpop.f32.mrf.mxu2  ;;  %v1084_v10 = vpop.f32.mrf.mxu3 }
 0x12a   :  { %v1185_v11 = vmax.f32 %v1184_v8, %v994_v9  ;;  %v817_v12 = vpop.f32.mrf.mxu0  ;;  %v907_v13 = vpop.f32.mrf.mxu1 }
 0x12b   :  { %v1187_v19 = vmax.f32 %v817_v12, %v907_v13 }
 0x12c   :  { %v1186_v15 = vmax.f32 %v1185_v11, %v1084_v10 }
 0x12e   :  { %v1258_v16 = vadd.f32 %v2121_v53, %v1186_v15 }
 0x130   :  { %v1294_v18 = vmax.f32 %v1258_v16, 0.0 }
 0x131   :  { %v997_v20 = vpop.f32.mrf.mxu2  ;;  %v1087_v21 = vpop.f32.mrf.mxu3 }
 0x132   :  { %v1877_v22 = vpack.c.bf16 %v1294_v18, %v1293_v17  ;;  %v819_v23 = vpop.f32.mrf.mxu0  ;;  %v909_v24 = vpop.f32.mrf.mxu1  ;;  %v1188_v25 = vmax.f32 %v1187_v19, %v997_v20 }
 0x133   :  { %v1190_v27 = vmax.f32 %v819_v23, %v909_v24 }
 0x134   :  { %1927 = vst [vmem:[%s2360_s3 + $0x48] sm:$0xff] %v1877_v22   ;;  %v1189_v26 = vmax.f32 %v1188_v25, %v1087_v21 }
 0x136   :  { %v1259_v33 = vadd.f32 %v2121_v53, %v1189_v26 }
 0x138   :  { %v1295_v36 = vmax.f32 %v1259_v33, 0.0 }
 0x139   :  { %v999_v28 = vpop.f32.mrf.mxu2  ;;  %v1089_v29 = vpop.f32.mrf.mxu3 }
 0x13a   :  { %v1191_v30 = vmax.f32 %v1190_v27, %v999_v28  ;;  %v822_v31 = vpop.f32.mrf.mxu0  ;;  %v912_v32 = vpop.f32.mrf.mxu1 }
 0x13b   :  { %v1193_v38 = vmax.f32 %v822_v31, %v912_v32 }
 0x13c   :  { %v1192_v34 = vmax.f32 %v1191_v30, %v1089_v29 }
 0x13e   :  { %v1260_v35 = vadd.f32 %v2121_v53, %v1192_v34 }
 0x140   :  { %v1296_v37 = vmax.f32 %v1260_v35, 0.0 }
 0x141   :  { %v1002_v39 = vpop.f32.mrf.mxu2  ;;  %v1092_v40 = vpop.f32.mrf.mxu3 }
 0x142   :  { %v1882_v41 = vpack.c.bf16 %v1296_v37, %v1295_v36  ;;  %v824_v42 = vpop.f32.mrf.mxu0  ;;  %v914_v43 = vpop.f32.mrf.mxu1  ;;  %v1194_v44 = vmax.f32 %v1193_v38, %v1002_v39 }
 0x143   :  { %v1196_v46 = vmax.f32 %v824_v42, %v914_v43 }
 0x144   :  { %1928 = vst [vmem:[%s2360_s3 + $0x50] sm:$0xff] %v1882_v41   ;;  %v1195_v45 = vmax.f32 %v1194_v44, %v1092_v40 }
 0x146   :  { %v1261_v52 = vadd.f32 %v2121_v53, %v1195_v45 }
 0x148   :  { %v1297_v56 = vmax.f32 %v1261_v52, 0.0 }
 0x149   :  { %v1004_v47 = vpop.f32.mrf.mxu2  ;;  %v1094_v48 = vpop.f32.mrf.mxu3 }
 0x14a   :  { %v1197_v49 = vmax.f32 %v1196_v46, %v1004_v47  ;;  %v827_v50 = vpop.f32.mrf.mxu0  ;;  %v917_v51 = vpop.f32.mrf.mxu1 }
 0x14b   :  { %v1199_v58 = vmax.f32 %v827_v50, %v917_v51 }
 0x14c   :  { %v1198_v54 = vmax.f32 %v1197_v49, %v1094_v48 }
 0x14e   :  { %v1262_v55 = vadd.f32 %v2121_v53, %v1198_v54 }
 0x150   :  { %v1298_v57 = vmax.f32 %v1262_v55, 0.0 }
 0x151   :  { %v1007_v59 = vpop.f32.mrf.mxu2  ;;  %v1097_v60 = vpop.f32.mrf.mxu3 }
 0x152   :  { %v1887_v61 = vpack.c.bf16 %v1298_v57, %v1297_v56  ;;  %v829_v62 = vpop.f32.mrf.mxu0  ;;  %v919_v63 = vpop.f32.mrf.mxu1  ;;  %v1200_v0 = vmax.f32 %v1199_v58, %v1007_v59 }
 0x153   :  { %v1202_v2 = vmax.f32 %v829_v62, %v919_v63 }
 0x154   :  { %1929 = vst [vmem:[%s2360_s3 + $0x58] sm:$0xff] %v1887_v61   ;;  %v1201_v1 = vmax.f32 %v1200_v0, %v1097_v60 }
 0x156   :  { %v1263_v8 = vadd.f32 %v2121_v53, %v1201_v1 }
 0x158   :  { %v1299_v11 = vmax.f32 %v1263_v8, 0.0 }
 0x159   :  { %v1009_v3 = vpop.f32.mrf.mxu2  ;;  %v1099_v4 = vpop.f32.mrf.mxu3 }
 0x15a   :  { %v1203_v5 = vmax.f32 %v1202_v2, %v1009_v3  ;;  %v832_v6 = vpop.f32.mrf.mxu0  ;;  %v922_v7 = vpop.f32.mrf.mxu1 }
 0x15b   :  { %v1205_v13 = vmax.f32 %v832_v6, %v922_v7 }
 0x15c   :  { %v1204_v9 = vmax.f32 %v1203_v5, %v1099_v4 }
 0x15e   :  { %v1264_v10 = vadd.f32 %v2121_v53, %v1204_v9 }
 0x160   :  { %v1300_v12 = vmax.f32 %v1264_v10, 0.0 }
 0x161   :  { %v1012_v14 = vpop.f32.mrf.mxu2  ;;  %v1102_v15 = vpop.f32.mrf.mxu3 }
 0x162   :  { %v1892_v16 = vpack.c.bf16 %v1300_v12, %v1299_v11  ;;  %v834_v17 = vpop.f32.mrf.mxu0  ;;  %v924_v18 = vpop.f32.mrf.mxu1  ;;  %v1206_v19 = vmax.f32 %v1205_v13, %v1012_v14 }
 0x163   :  { %v1208_v21 = vmax.f32 %v834_v17, %v924_v18 }
 0x164   :  { %1930 = vst [vmem:[%s2360_s3 + $0x60] sm:$0xff] %v1892_v16   ;;  %v1207_v20 = vmax.f32 %v1206_v19, %v1102_v15 }
 0x166   :  { %v1265_v27 = vadd.f32 %v2121_v53, %v1207_v20 }
 0x168   :  { %v1301_v30 = vmax.f32 %v1265_v27, 0.0 }
 0x169   :  { %v1014_v22 = vpop.f32.mrf.mxu2  ;;  %v1104_v23 = vpop.f32.mrf.mxu3 }
 0x16a   :  { %v1209_v24 = vmax.f32 %v1208_v21, %v1014_v22  ;;  %v837_v25 = vpop.f32.mrf.mxu0  ;;  %v927_v26 = vpop.f32.mrf.mxu1 }
 0x16b   :  { %v1211_v32 = vmax.f32 %v837_v25, %v927_v26 }
 0x16c   :  { %v1210_v28 = vmax.f32 %v1209_v24, %v1104_v23 }
 0x16e   :  { %v1266_v29 = vadd.f32 %v2121_v53, %v1210_v28 }
 0x170   :  { %v1302_v31 = vmax.f32 %v1266_v29, 0.0 }
 0x171   :  { %v1017_v33 = vpop.f32.mrf.mxu2  ;;  %v1107_v34 = vpop.f32.mrf.mxu3 }
 0x172   :  { %v1897_v35 = vpack.c.bf16 %v1302_v31, %v1301_v30  ;;  %v839_v36 = vpop.f32.mrf.mxu0  ;;  %v929_v37 = vpop.f32.mrf.mxu1  ;;  %v1212_v38 = vmax.f32 %v1211_v32, %v1017_v33 }
 0x173   :  { %v1214_v40 = vmax.f32 %v839_v36, %v929_v37 }
 0x174   :  { %1931 = vst [vmem:[%s2360_s3 + $0x68] sm:$0xff] %v1897_v35   ;;  %v1213_v39 = vmax.f32 %v1212_v38, %v1107_v34 }
 0x176   :  { %v1267_v46 = vadd.f32 %v2121_v53, %v1213_v39 }
 0x178   :  { %v1303_v49 = vmax.f32 %v1267_v46, 0.0 }
 0x179   :  { %v1019_v41 = vpop.f32.mrf.mxu2  ;;  %v1109_v42 = vpop.f32.mrf.mxu3 }
 0x17a   :  { %v1215_v43 = vmax.f32 %v1214_v40, %v1019_v41  ;;  %v842_v44 = vpop.f32.mrf.mxu0  ;;  %v932_v45 = vpop.f32.mrf.mxu1 }
 0x17b   :  { %v1217_v51 = vmax.f32 %v842_v44, %v932_v45 }
 0x17c   :  { %v1216_v47 = vmax.f32 %v1215_v43, %v1109_v42 }
 0x17e   :  { %v1268_v48 = vadd.f32 %v2121_v53, %v1216_v47 }
 0x180   :  { %v1304_v50 = vmax.f32 %v1268_v48, 0.0 }
 0x181   :  { %v1022_v52 = vpop.f32.mrf.mxu2  ;;  %v1112_v54 = vpop.f32.mrf.mxu3 }
 0x182   :  { %v1902_v55 = vpack.c.bf16 %v1304_v50, %v1303_v49  ;;  %v844_v56 = vpop.f32.mrf.mxu0  ;;  %v934_v57 = vpop.f32.mrf.mxu1  ;;  %v1218_v58 = vmax.f32 %v1217_v51, %v1022_v52 }
 0x183   :  { %v1220_v60 = vmax.f32 %v844_v56, %v934_v57 }
 0x184   :  { %1932 = vst [vmem:[%s2360_s3 + $0x70] sm:$0xff] %v1902_v55   ;;  %v1219_v59 = vmax.f32 %v1218_v58, %v1112_v54 }
 0x186   :  { %v1269_v2 = vadd.f32 %v2121_v53, %v1219_v59 }
 0x188   :  { %v1305_v5 = vmax.f32 %v1269_v2, 0.0 }
 0x189   :  { %v1024_v61 = vpop.f32.mrf.mxu2  ;;  %v1114_v62 = vpop.f32.mrf.mxu3 }
 0x18a   :  { %v1221_v63 = vmax.f32 %v1220_v60, %v1024_v61  ;;  %v847_v0 = vpop.f32.mrf.mxu0  ;;  %v937_v1 = vpop.f32.mrf.mxu1 }
 0x18b   :  { %v1223_v7 = vmax.f32 %v847_v0, %v937_v1 }
 0x18c   :  { %v1222_v3 = vmax.f32 %v1221_v63, %v1114_v62 }
 0x18e   :  { %v1270_v4 = vadd.f32 %v2121_v53, %v1222_v3 }
 0x190   :  { %v1306_v6 = vmax.f32 %v1270_v4, 0.0 }
 0x191   :  { %v1027_v8 = vpop.f32.mrf.mxu2  ;;  %v1117_v9 = vpop.f32.mrf.mxu3 }
 0x192   :  { %v1907_v10 = vpack.c.bf16 %v1306_v6, %v1305_v5  ;;  %v849_v11 = vpop.f32.mrf.mxu0  ;;  %v939_v12 = vpop.f32.mrf.mxu1  ;;  %v1224_v13 = vmax.f32 %v1223_v7, %v1027_v8 }
 0x193   :  { %v1226_v15 = vmax.f32 %v849_v11, %v939_v12 }
 0x194   :  { %1933 = vst [vmem:[%s2360_s3 + $0x78] sm:$0xff] %v1907_v10   ;;  %v1225_v14 = vmax.f32 %v1224_v13, %v1117_v9 }
 0x196   :  { %v1271_v21 = vadd.f32 %v2121_v53, %v1225_v14 }
 0x198   :  { %v1307_v24 = vmax.f32 %v1271_v21, 0.0 }
 0x199   :  { %v1029_v16 = vpop.f32.mrf.mxu2  ;;  %v1119_v17 = vpop.f32.mrf.mxu3 }
 0x19a   :  { %v1227_v18 = vmax.f32 %v1226_v15, %v1029_v16  ;;  %v852_v19 = vpop.f32.mrf.mxu0  ;;  %v942_v20 = vpop.f32.mrf.mxu1 }
 0x19b   :  { %v1229_v26 = vmax.f32 %v852_v19, %v942_v20 }
 0x19c   :  { %v1228_v22 = vmax.f32 %v1227_v18, %v1119_v17 }
 0x19e   :  { %v1272_v23 = vadd.f32 %v2121_v53, %v1228_v22 }
 0x1a0   :  { %v1308_v25 = vmax.f32 %v1272_v23, 0.0 }
 0x1a1   :  { %v1032_v27 = vpop.f32.mrf.mxu2  ;;  %v1122_v28 = vpop.f32.mrf.mxu3 }
 0x1a2   :  { %v1912_v29 = vpack.c.bf16 %v1308_v25, %v1307_v24  ;;  %v1230_v30 = vmax.f32 %v1229_v26, %v1032_v27  ;;  %v854_v31 = vpop.f32.mrf.mxu0  ;;  %v944_v32 = vpop.f32.mrf.mxu1 }
 0x1a3   :  { %v1232_v34 = vmax.f32 %v854_v31, %v944_v32 }
 0x1a4   :  { %1934 = vst [vmem:[%s2360_s3 + $0x80] sm:$0xff] %v1912_v29   ;;  %v1231_v33 = vmax.f32 %v1230_v30, %v1122_v28 }
 0x1a6   :  { %v1273_v38 = vadd.f32 %v2121_v53, %v1231_v33 }
 0x1a8   :  { %v1309_v41 = vmax.f32 %v1273_v38, 0.0 }
 0x1a9   :  { %v1034_v35 = vpop.f32.mrf.mxu2  ;;  %v1124_v37 = vpop.f32.mrf.mxu3 }
 0x1aa   :  { %v1233_v36 = vmax.f32 %v1232_v34, %v1034_v35 }
 0x1ac   :  { %v1234_v39 = vmax.f32 %v1233_v36, %v1124_v37 }
 0x1ae   :  { %v1274_v40 = vadd.f32 %v2121_v53, %v1234_v39 }
 0x1b0   :  { %v1310_v42 = vmax.f32 %v1274_v40, 0.0 }
 0x1b2   :  { %v1917_v43 = vpack.c.bf16 %v1310_v42, %v1309_v41 }
 0x1b4   :  { %1935 = vst [vmem:[%s2360_s3 + $0x88] sm:$0xff] %v1917_v43  }

// kernel: neural_net_forward.5
= control target key start
LH: loop header
LB: loop body
LE: loop exit
PB: predicated region body
PF: predicated region fallthrough
CT: control target
= control target key end

     0   :  { %vm539_vm0 = vcmask 261120   ;;  %s2114_s1 = inlined_call_operand.vmem [shape: bf16[288,128], index: 1, kind: input, shape index: {}]   ;;  %s2115_s0 = inlined_call_operand.vmem [shape: bf16[4,80,288], index: 0, kind: input, shape index: {}]   ;;  %s2116_s2 = inlined_call_operand.vmem [shape: f32[1,128], index: 2, kind: input, shape index: {}]   ;;  %s2117_s3 = inlined_call_operand.vmem [shape: bf16[80,128], index: 3, kind: output, shape index: {}]  }
   0x1   :  { %v1404_v0 = vld [vmem:[%s2114_s1 + $0x38] sm:$0xff]  ;;  %v1492_v2 = vld [vmem:[%s2114_s1 + $0x88] sm:$0xff]  ;;  %v1403_v3 = vld [vmem:[%s2114_s1 + $0x30] sm:$0xff] }
   0x2   :  { %v1412_v1 = vld [vmem:[%s2114_s1 + $0x78] sm:$0xff]  ;;  %600 = vmatpush.bf16.msra.mxu0 %v1404_v0  ;;  %1444 = vmatpush.bf16.msra.mxu3 %v1404_v0  ;;  %v1411_v4 = vld [vmem:[%s2114_s1 + $0x70] sm:$0xff]  ;;  %v1504_v5 = vld [vmem:[%s2114_s1 + $0x80] sm:$0xff] }
   0x3   :  { %709 = vmatpush.bf16.msra.mxu1 %v1412_v1  ;;  %824 = vmatpush.bf16.msra.mxu2 %v1492_v2  ;;  %v1015_v6 = vld [vmem:[%s2115_s0 + $0x8] sm:$0xf]  ;;  %v1339_v7 = vld [vmem:[%s2115_s0 + $0x10] sm:$0xf0]  ;;  %v1401_v11 = vld [vmem:[%s2114_s1 + $0x20] sm:$0xff] }
   0x4   :  { %v1016_v8 = vor.u32 %v1339_v7, %v1015_v6  ;;  %v1402_v9 = vld [vmem:[%s2114_s1 + $0x28] sm:$0xff]  ;;  %v1409_v12 = vld [vmem:[%s2114_s1 + $0x60] sm:$0xff]  ;;  %v1400_v13 = vld [vmem:[%s2114_s1 + $0x18] sm:$0xff] }
   0x5   :  { %v1410_v10 = vld [vmem:[%s2114_s1 + $0x68] sm:$0xff]  ;;  %v1408_v14 = vld [vmem:[%s2114_s1 + $0x58] sm:$0xff]  ;;  %v1399_v15 = vld [vmem:[%s2114_s1 + $0x10] sm:$0xff] }
   0x6   :  { %601 = vmatpush.bf16.msra.mxu0 %v1403_v3  ;;  %1445 = vmatpush.bf16.msra.mxu3 %v1403_v3  ;;  %v1407_v16 = vld [vmem:[%s2114_s1 + $0x50] sm:$0xff]  ;;  %v1027_v17 = vld [vmem:[%s2115_s0 + $0x20] sm:$0xf]  ;;  %v1342_v18 = vld [vmem:[%s2115_s0 + $0x28] sm:$0xf0] }
   0x7   :  { %710 = vmatpush.bf16.msra.mxu1 %v1411_v4  ;;  %825 = vmatpush.bf16.msra.mxu2 %v1504_v5  ;;  %v1028_v19 = vor.u32 %v1342_v18, %v1027_v17  ;;  %v1398_v20 = vld [vmem:[%s2114_s1 + $0x8] sm:$0xff]  ;;  %v1397_v22 = vld [vmem:[%s2114_s1] sm:$0xff]  ;;  %v1383_v27 = vld [vmem:[%s2115_s0 + $0x170] sm:$0xf0] }
   0x8   :  { %v1406_v21 = vld [vmem:[%s2114_s1 + $0x48] sm:$0xff]  ;;  %v1405_v23 = vld [vmem:[%s2114_s1 + $0x40] sm:$0xff]  ;;  %v1009_v29 = vld [vmem:[%s2115_s0 + $0xc] sm:$0xf0] }
   0x9   :  { %v1007_v24 = vld [vmem:[%s2115_s0] sm:$0xf]  ;;  %v1338_v25 = vld [vmem:[%s2115_s0 + $0x8] sm:$0xf0]  ;;  %v1187_v26 = vld [vmem:[%s2115_s0 + $0x168] sm:$0xf] }
   0xa   :  { %1317 = vmatmul.msk.bf16.vlgmr.msra.gmra.mxu2 %vm539_vm0, %v1016_v8  ;;  %602 = vmatpush.bf16.msra.mxu0 %v1402_v9  ;;  %v1337_v28 = vld [vmem:[%s2115_s0 + $0x4] sm:$0xf]  ;;  %v1008_v30 = vor.u32 %v1338_v25, %v1007_v24  ;;  %v1188_v31 = vor.u32 %v1383_v27, %v1187_v26  ;;  %v1039_v33 = vld [vmem:[%s2115_s0 + $0x38] sm:$0xf]  ;;  %v1199_v38 = vld [vmem:[%s2115_s0 + $0x180] sm:$0xf] }
   0xb   :  { %1446 = vmatpush.bf16.msra.mxu3 %v1402_v9  ;;  %711 = vmatpush.bf16.msra.mxu1 %v1410_v10  ;;  %v1012_v32 = vor.u32 %v1337_v28, %v1009_v29  ;;  %v1345_v34 = vld [vmem:[%s2115_s0 + $0x40] sm:$0xf0]  ;;  %v1019_v36 = vld [vmem:[%s2115_s0 + $0x18] sm:$0xf]  ;;  %v1386_v39 = vld [vmem:[%s2115_s0 + $0x188] sm:$0xf0] }
   0xc   :  { %v1040_v35 = vor.u32 %v1345_v34, %v1039_v33  ;;  %v1341_v37 = vld [vmem:[%s2115_s0 + $0x20] sm:$0xf0]  ;;  %v1340_v40 = vld [vmem:[%s2115_s0 + $0x1c] sm:$0xf]  ;;  %v1021_v41 = vld [vmem:[%s2115_s0 + $0x24] sm:$0xf0]  ;;  %v1200_v43 = vor.u32 %v1386_v39, %v1199_v38 }
   0xd   :  { %v1020_v42 = vor.u32 %v1341_v37, %v1019_v36  ;;  %v1024_v44 = vor.u32 %v1340_v40, %v1021_v41  ;;  %v1051_v45 = vld [vmem:[%s2115_s0 + $0x50] sm:$0xf]  ;;  %v1348_v46 = vld [vmem:[%s2115_s0 + $0x58] sm:$0xf0]  ;;  %v1211_v50 = vld [vmem:[%s2115_s0 + $0x198] sm:$0xf] }
   0xe   :  { %603 = vmatpush.bf16.msra.mxu0 %v1401_v11  ;;  %v1052_v47 = vor.u32 %v1348_v46, %v1051_v45  ;;  %v1031_v48 = vld [vmem:[%s2115_s0 + $0x30] sm:$0xf]  ;;  %v1344_v49 = vld [vmem:[%s2115_s0 + $0x38] sm:$0xf0]  ;;  %v1389_v51 = vld [vmem:[%s2115_s0 + $0x1a0] sm:$0xf0] }
   0xf   :  { %1447 = vmatpush.bf16.msra.mxu3 %v1401_v11  ;;  %712 = vmatpush.bf16.msra.mxu1 %v1409_v12  ;;  %v1343_v52 = vld [vmem:[%s2115_s0 + $0x34] sm:$0xf]  ;;  %v1033_v53 = vld [vmem:[%s2115_s0 + $0x3c] sm:$0xf0]  ;;  %v1032_v54 = vor.u32 %v1344_v49, %v1031_v48  ;;  %v1212_v55 = vor.u32 %v1389_v51, %v1211_v50  ;;  %v1063_v57 = vld [vmem:[%s2115_s0 + $0x68] sm:$0xf] }
  0x10   :  { %v1036_v56 = vor.u32 %v1343_v52, %v1033_v53  ;;  %v1351_v58 = vld [vmem:[%s2115_s0 + $0x70] sm:$0xf0]  ;;  %v1043_v60 = vld [vmem:[%s2115_s0 + $0x48] sm:$0xf]  ;;  %v1223_v62 = vld [vmem:[%s2115_s0 + $0x1b0] sm:$0xf] }
  0x11   :  { %v1064_v59 = vor.u32 %v1351_v58, %v1063_v57  ;;  %v1347_v61 = vld [vmem:[%s2115_s0 + $0x50] sm:$0xf0]  ;;  %v1392_v63 = vld [vmem:[%s2115_s0 + $0x1b8] sm:$0xf0]  ;;  %v1346_v0 = vld [vmem:[%s2115_s0 + $0x4c] sm:$0xf] }
  0x12   :  { %604 = vmatpush.bf16.msra.mxu0 %v1400_v13  ;;  %v1224_v3 = vor.u32 %v1392_v63, %v1223_v62  ;;  %v1354_v6 = vld [vmem:[%s2115_s0 + $0x88] sm:$0xf0]  ;;  %v1055_v8 = vld [vmem:[%s2115_s0 + $0x60] sm:$0xf]  ;;  %v1395_v11 = vld [vmem:[%s2115_s0 + $0x1d0] sm:$0xf0] }
  0x13   :  { %1448 = vmatpush.bf16.msra.mxu3 %v1400_v13  ;;  %713 = vmatpush.bf16.msra.mxu1 %v1408_v14  ;;  %v1350_v9 = vld [vmem:[%s2115_s0 + $0x68] sm:$0xf0]  ;;  %v1057_v13 = vld [vmem:[%s2115_s0 + $0x6c] sm:$0xf0]  ;;  %v1087_v17 = vld [vmem:[%s2115_s0 + $0x98] sm:$0xf] }
  0x14   :  { %v1357_v18 = vld [vmem:[%s2115_s0 + $0xa0] sm:$0xf0]  ;;  %v1382_v24 = vld [vmem:[%s2115_s0 + $0x16c] sm:$0xf]  ;;  %v1189_v25 = vld [vmem:[%s2115_s0 + $0x174] sm:$0xf0] }
  0x15   :  { %v1192_v28 = vor.u32 %v1382_v24, %v1189_v25  ;;  %v1099_v29 = vld [vmem:[%s2115_s0 + $0xb0] sm:$0xf]  ;;  %v1356_v33 = vld [vmem:[%s2115_s0 + $0x98] sm:$0xf0]  ;;  %v1355_v34 = vld [vmem:[%s2115_s0 + $0x94] sm:$0xf] }
  0x16   :  { %605 = vmatpush.bf16.msra.mxu0 %v1399_v15  ;;  %v1385_v36 = vld [vmem:[%s2115_s0 + $0x184] sm:$0xf]  ;;  %v1201_v37 = vld [vmem:[%s2115_s0 + $0x18c] sm:$0xf0]  ;;  %v1111_v41 = vld [vmem:[%s2115_s0 + $0xc8] sm:$0xf] }
  0x17   :  { %1449 = vmatpush.bf16.msra.mxu3 %v1399_v15  ;;  %714 = vmatpush.bf16.msra.mxu1 %v1407_v16  ;;  %v1204_v40 = vor.u32 %v1385_v36, %v1201_v37  ;;  %v1359_v45 = vld [vmem:[%s2115_s0 + $0xb0] sm:$0xf0]  ;;  %v1358_v46 = vld [vmem:[%s2115_s0 + $0xac] sm:$0xf]  ;;  %v1388_v48 = vld [vmem:[%s2115_s0 + $0x19c] sm:$0xf] }
  0x18   :  { %v1213_v49 = vld [vmem:[%s2115_s0 + $0x1a4] sm:$0xf0]  ;;  %v1103_v58 = vld [vmem:[%s2115_s0 + $0xc0] sm:$0xf]  ;;  %v1391_v62 = vld [vmem:[%s2115_s0 + $0x1b4] sm:$0xf] }
  0x19   :  { %v1216_v53 = vor.u32 %v1388_v48, %v1213_v49  ;;  %v1225_v63 = vld [vmem:[%s2115_s0 + $0x1bc] sm:$0xf0] }
  0x1a   :  { %1318 = vmatmul.msk.bf16.gmra.mxu2 %vm539_vm0, %v1028_v19  ;;  %606 = vmatpush.bf16.msra.mxu0 %v1398_v20  ;;  %v1088_v19 = vor.u32 %v1357_v18, %v1087_v17  ;;  %v1115_v17 = vld [vmem:[%s2115_s0 + $0xd8] sm:$0xf]  ;;  %v1365_v18 = vld [vmem:[%s2115_s0 + $0xe0] sm:$0xf0] }
  0x1b   :  { %1450 = vmatpush.bf16.msra.mxu3 %v1398_v20  ;;  %715 = vmatpush.bf16.msra.mxu1 %v1406_v21  ;;  %v1067_v20 = vld [vmem:[%s2115_s0 + $0x78] sm:$0xf]  ;;  %v1116_v25 = vor.u32 %v1365_v18, %v1115_v17 }
  0x1e   :  { %607 = vmatpush.bf16.msra.mxu0 %v1397_v22 }
  0x1f   :  { %1451 = vmatpush.bf16.msra.mxu3 %v1397_v22  ;;  %716 = vmatpush.bf16.msra.mxu1 %v1405_v23  ;;  %v1352_v22 = vld [vmem:[%s2115_s0 + $0x7c] sm:$0xf] }
  0x21   :  { %608 = vmatmul.bf16.vlgmr.msra.gmra.mxu0 %v1008_v30  ;;  %v1360_v30 = vld [vmem:[%s2115_s0 + $0xb8] sm:$0xf0] }
  0x22   :  { %683 = vmatmul.bf16.vlgmr.msra.gmra.mxu3 %v1188_v31  ;;  %717 = vmatmul.bf16.vlgmr.msra.gmra.mxu1 %v1012_v32  ;;  %v1100_v31 = vor.u32 %v1360_v30, %v1099_v29  ;;  %v1079_v32 = vld [vmem:[%s2115_s0 + $0x90] sm:$0xf] }
  0x23   :  { %1452 = vmatpush.bf16.msrb.mxu3 %v1412_v1  ;;  %v1045_v1 = vld [vmem:[%s2115_s0 + $0x54] sm:$0xf0]  ;;  %v1080_v38 = vor.u32 %v1356_v33, %v1079_v32  ;;  %v1147_v32 = vld [vmem:[%s2115_s0 + $0x110] sm:$0xf]  ;;  %v1372_v33 = vld [vmem:[%s2115_s0 + $0x118] sm:$0xf0] }
  0x24   :  { %v1148_v37 = vor.u32 %v1372_v33, %v1147_v32  ;;  %v1373_v32 = vld [vmem:[%s2115_s0 + $0x124] sm:$0xf]  ;;  %v1153_v33 = vld [vmem:[%s2115_s0 + $0x12c] sm:$0xf0] }
  0x27   :  { %1453 = vmatpush.bf16.msrb.mxu3 %v1411_v4  ;;  %v1048_v4 = vor.u32 %v1346_v0, %v1045_v1 }
  0x2a   :  { %1319 = vmatmul.msk.bf16.gmra.mxu2 %vm539_vm0, %v1040_v35  ;;  %v1081_v35 = vld [vmem:[%s2115_s0 + $0x9c] sm:$0xf0] }
  0x2b   :  { %1454 = vmatpush.bf16.msrb.mxu3 %v1410_v10  ;;  %v1235_v10 = vld [vmem:[%s2115_s0 + $0x1c8] sm:$0xf]  ;;  %v1084_v39 = vor.u32 %v1355_v34, %v1081_v35 }
  0x2c   :  { %v1236_v15 = vor.u32 %v1395_v11, %v1235_v10 }
  0x2f   :  { %1455 = vmatpush.bf16.msrb.mxu3 %v1409_v12  ;;  %v1349_v12 = vld [vmem:[%s2115_s0 + $0x64] sm:$0xf] }
  0x31   :  { %613 = vmatmul.bf16.gmra.mxu0 %v1020_v42  ;;  %v1363_v42 = vld [vmem:[%s2115_s0 + $0xd0] sm:$0xf0] }
  0x32   :  { %688 = vmatmul.bf16.gmra.mxu3 %v1200_v43  ;;  %722 = vmatmul.bf16.gmra.mxu1 %v1024_v44  ;;  %v1112_v43 = vor.u32 %v1363_v42, %v1111_v41  ;;  %v1091_v44 = vld [vmem:[%s2115_s0 + $0xa8] sm:$0xf]  ;;  %v1127_v41 = vld [vmem:[%s2115_s0 + $0xf0] sm:$0xf]  ;;  %v1368_v42 = vld [vmem:[%s2115_s0 + $0xf8] sm:$0xf0] }
  0x33   :  { %1456 = vmatpush.bf16.msrb.mxu3 %v1408_v14  ;;  %v1056_v14 = vor.u32 %v1350_v9, %v1055_v8  ;;  %v1092_v51 = vor.u32 %v1359_v45, %v1091_v44  ;;  %v1135_v8 = vld [vmem:[%s2115_s0 + $0xf8] sm:$0xf]  ;;  %v1369_v9 = vld [vmem:[%s2115_s0 + $0x100] sm:$0xf0]  ;;  %v1129_v44 = vld [vmem:[%s2115_s0 + $0xfc] sm:$0xf0]  ;;  %v1128_v49 = vor.u32 %v1368_v42, %v1127_v41  ;;  %v1156_v42 = vor.u32 %v1373_v32, %v1153_v33 }
  0x34   :  { %v1219_v45 = vld [vmem:[%s2115_s0 + $0x1a0] sm:$0xf] }
  0x37   :  { %1457 = vmatpush.bf16.msrb.mxu3 %v1407_v16  ;;  %v1060_v16 = vor.u32 %v1349_v12, %v1057_v13  ;;  %v1136_v13 = vor.u32 %v1369_v9, %v1135_v8 }
  0x3a   :  { %1320 = vmatmul.msk.bf16.gmra.mxu2 %vm539_vm0, %v1052_v47  ;;  %v1093_v47 = vld [vmem:[%s2115_s0 + $0xb4] sm:$0xf0] }
  0x3b   :  { %1458 = vmatpush.bf16.msrb.mxu3 %v1406_v21  ;;  %v1353_v21 = vld [vmem:[%s2115_s0 + $0x80] sm:$0xf0]  ;;  %v1096_v52 = vor.u32 %v1358_v46, %v1093_v47  ;;  %v1390_v46 = vld [vmem:[%s2115_s0 + $0x1a8] sm:$0xf0] }
  0x3c   :  { %v1068_v26 = vor.u32 %v1353_v21, %v1067_v20  ;;  %v1117_v20 = vld [vmem:[%s2115_s0 + $0xe4] sm:$0xf0]  ;;  %v1394_v21 = vld [vmem:[%s2115_s0 + $0x1cc] sm:$0xf] }
  0x3f   :  { %1459 = vmatpush.bf16.msrb.mxu3 %v1405_v23  ;;  %v1069_v23 = vld [vmem:[%s2115_s0 + $0x84] sm:$0xf0] }
  0x40   :  { %v1072_v27 = vor.u32 %v1352_v22, %v1069_v23  ;;  %v1237_v22 = vld [vmem:[%s2115_s0 + $0x1d4] sm:$0xf0] }
  0x41   :  { %618 = vmatmul.bf16.gmra.mxu0 %v1032_v54  ;;  %v1123_v54 = vld [vmem:[%s2115_s0 + $0xe0] sm:$0xf] }
  0x42   :  { %693 = vmatmul.bf16.gmra.mxu3 %v1212_v55  ;;  %727 = vmatmul.bf16.gmra.mxu1 %v1036_v56  ;;  %v1366_v55 = vld [vmem:[%s2115_s0 + $0xe8] sm:$0xf0] }
  0x43   :  { %1460 = vmatpush.bf16.msra.mxu3 %v1492_v2  ;;  %v1044_v2 = vor.u32 %v1347_v61, %v1043_v60  ;;  %v1124_v57 = vor.u32 %v1366_v55, %v1123_v54  ;;  %v1361_v60 = vld [vmem:[%s2115_s0 + $0xc4] sm:$0xf]  ;;  %v1105_v61 = vld [vmem:[%s2115_s0 + $0xcc] sm:$0xf0] }
  0x47   :  { %1461 = vmatpush.bf16.msra.mxu3 %v1504_v5  ;;  %v1075_v5 = vld [vmem:[%s2115_s0 + $0x80] sm:$0xf] }
  0x48   :  { %v1076_v7 = vor.u32 %v1354_v6, %v1075_v5 }
  0x4a   :  { %1321 = vmatmul.msk.bf16.gmra.mxu2 %vm539_vm0, %v1064_v59  ;;  %v1362_v59 = vld [vmem:[%s2115_s0 + $0xc8] sm:$0xf0] }
  0x4b   :  { %v1104_v1 = vor.u32 %v1362_v59, %v1103_v58 }
  0x51   :  { %623 = vmatmul.bf16.gmra.mxu0 %v1044_v2 }
  0x52   :  { %698 = vmatmul.bf16.gmra.mxu3 %v1224_v3  ;;  %732 = vmatmul.bf16.gmra.mxu1 %v1048_v4  ;;  %v1108_v3 = vor.u32 %v1361_v60, %v1105_v61  ;;  %v1228_v4 = vor.u32 %v1391_v62, %v1225_v63 }
  0x5a   :  { %1322 = vmatmul.msk.bf16.gmra.mxu2 %vm539_vm0, %v1076_v7 }
  0x61   :  { %628 = vmatmul.bf16.gmra.mxu0 %v1056_v14 }
  0x62   :  { %703 = vmatmul.bf16.gmra.mxu3 %v1236_v15  ;;  %737 = vmatmul.bf16.gmra.mxu1 %v1060_v16 }
  0x6a   :  { %1323 = vmatmul.msk.bf16.gmra.mxu2 %vm539_vm0, %v1088_v19  ;;  %v1364_v19 = vld [vmem:[%s2115_s0 + $0xdc] sm:$0xf] }
  0x71   :  { %633 = vmatmul.bf16.gmra.mxu0 %v1068_v26 }
  0x72   :  { %742 = vmatmul.bf16.gmra.mxu1 %v1072_v27  ;;  %792 = vmatmul.bf16.vlgmr.msrb.gmra.mxu3 %v1192_v28  ;;  %v1120_v27 = vor.u32 %v1364_v19, %v1117_v20  ;;  %v1240_v28 = vor.u32 %v1394_v21, %v1237_v22  ;;  %v1171_v19 = vld [vmem:[%s2115_s0 + $0x140] sm:$0xf]  ;;  %v1378_v20 = vld [vmem:[%s2115_s0 + $0x148] sm:$0xf0] }
  0x7a   :  { %1324 = vmatmul.msk.bf16.gmra.mxu2 %vm539_vm0, %v1100_v31 }
  0x81   :  { %638 = vmatmul.bf16.gmra.mxu0 %v1080_v38 }
  0x82   :  { %747 = vmatmul.bf16.gmra.mxu1 %v1084_v39  ;;  %797 = vmatmul.bf16.gmra.mxu3 %v1204_v40 }
  0x8a   :  { %1325 = vmatmul.msk.bf16.gmra.mxu2 %vm539_vm0, %v1112_v43  ;;  %v1367_v43 = vld [vmem:[%s2115_s0 + $0xf4] sm:$0xf] }
  0x8d   :  { %v827_v50 = vpop.f32.mrf.mxu2 }
  0x91   :  { %643 = vmatmul.bf16.gmra.mxu0 %v1092_v51  ;;  %v1132_v51 = vor.u32 %v1367_v43, %v1129_v44 }
  0x92   :  { %752 = vmatmul.bf16.gmra.mxu1 %v1096_v52  ;;  %802 = vmatmul.bf16.gmra.mxu3 %v1216_v53  ;;  %v1220_v52 = vor.u32 %v1390_v46, %v1219_v45 }
  0x95   :  { %v829_v56 = vpop.f32.mrf.mxu2 }
  0x9a   :  { %1326 = vmatmul.msk.bf16.gmra.mxu2 %vm539_vm0, %v1124_v57  ;;  %v1375_v57 = vld [vmem:[%s2115_s0 + $0x130] sm:$0xf0] }
  0x9d   :  { %v832_v0 = vpop.f32.mrf.mxu2 }
  0x9e   :  { %v609_v2 = vpop.f32.mrf.mxu0 }
  0x9f   :  { %v718_v5 = vpop.f32.mrf.mxu1 }
  0xa0   :  { %v719_v6 = vadd.f32 %v718_v5, %v609_v2  ;;  %v1371_v2 = vld [vmem:[%s2115_s0 + $0x110] sm:$0xf0]  ;;  %v1231_v5 = vld [vmem:[%s2115_s0 + $0x1b8] sm:$0xf] }
  0xa1   :  { %648 = vmatmul.bf16.gmra.mxu0 %v1104_v1  ;;  %v1139_v1 = vld [vmem:[%s2115_s0 + $0x108] sm:$0xf] }
  0xa2   :  { %v1777_v7 = vadd.f32 %v827_v50, %v719_v6  ;;  %757 = vmatmul.bf16.gmra.mxu1 %v1108_v3  ;;  %807 = vmatmul.bf16.gmra.mxu3 %v1228_v4  ;;  %v1370_v3 = vld [vmem:[%s2115_s0 + $0x10c] sm:$0xf]  ;;  %v1141_v4 = vld [vmem:[%s2115_s0 + $0x114] sm:$0xf0]  ;;  %v1393_v6 = vld [vmem:[%s2115_s0 + $0x1c0] sm:$0xf0] }
  0xa5   :  { %v1785_v10 = vpop.f32.mrf.mxu3  ;;  %v834_v11 = vpop.f32.mrf.mxu2 }
  0xa6   :  { %v611_v12 = vpop.f32.mrf.mxu0 }
  0xa7   :  { %v720_v14 = vpop.f32.mrf.mxu1 }
  0xa8   :  { %v721_v15 = vadd.f32 %v720_v14, %v611_v12  ;;  %v1232_v14 = vor.u32 %v1393_v6, %v1231_v5 }
  0xaa   :  { %v1787_v16 = vadd.f32 %v829_v56, %v721_v15  ;;  %1327 = vmatmul.msk.bf16.gmra.mxu2 %vm539_vm0, %v1136_v13  ;;  %v1159_v56 = vld [vmem:[%s2115_s0 + $0x128] sm:$0xf]  ;;  %v1144_v13 = vor.u32 %v1370_v3, %v1141_v4 }
  0xab   :  { %v1160_v61 = vor.u32 %v1375_v57, %v1159_v56 }
  0xad   :  { %v1808_v23 = vpop.f32.mrf.mxu3  ;;  %v837_v24 = vpop.f32.mrf.mxu2 }
  0xae   :  { %v614_v26 = vpop.f32.mrf.mxu0 }
  0xaf   :  { %v723_v29 = vpop.f32.mrf.mxu1 }
  0xb0   :  { %v724_v30 = vadd.f32 %v723_v29, %v614_v26  ;;  %v1151_v29 = vld [vmem:[%s2115_s0 + $0x120] sm:$0xf] }
  0xb1   :  { %653 = vmatmul.bf16.gmra.mxu0 %v1116_v25  ;;  %v1172_v25 = vor.u32 %v1378_v20, %v1171_v19 }
  0xb2   :  { %v1810_v31 = vadd.f32 %v832_v0, %v724_v30  ;;  %762 = vmatmul.bf16.gmra.mxu1 %v1120_v27  ;;  %812 = vmatmul.bf16.gmra.mxu3 %v1240_v28  ;;  %v1374_v30 = vld [vmem:[%s2115_s0 + $0x128] sm:$0xf0] }
  0xb5   :  { %v1818_v34 = vpop.f32.mrf.mxu3  ;;  %v839_v35 = vpop.f32.mrf.mxu2 }
  0xb6   :  { %v616_v36 = vpop.f32.mrf.mxu0 }
  0xb7   :  { %v725_v38 = vpop.f32.mrf.mxu1 }
  0xb8   :  { %v726_v39 = vadd.f32 %v725_v38, %v616_v36  ;;  %v1396_v36 = vld [vmem:[%s2115_s0 + $0x1d8] sm:$0xf0] }
  0xba   :  { %v1820_v40 = vadd.f32 %v834_v11, %v726_v39  ;;  %1328 = vmatmul.msk.bf16.gmra.mxu2 %vm539_vm0, %v1148_v37  ;;  %v1140_v11 = vor.u32 %v1371_v2, %v1139_v1  ;;  %v1152_v39 = vor.u32 %v1374_v30, %v1151_v29  ;;  %v1177_v29 = vld [vmem:[%s2115_s0 + $0x15c] sm:$0xf0] }
  0xbd   :  { %v1841_v47 = vpop.f32.mrf.mxu3  ;;  %v842_v48 = vpop.f32.mrf.mxu2 }
  0xbe   :  { %v619_v50 = vpop.f32.mrf.mxu0 }
  0xbf   :  { %v728_v53 = vpop.f32.mrf.mxu1 }
  0xc0   :  { %v729_v54 = vadd.f32 %v728_v53, %v619_v50 }
  0xc1   :  { %658 = vmatmul.bf16.gmra.mxu0 %v1128_v49  ;;  %v1381_v49 = vld [vmem:[%s2115_s0 + $0x160] sm:$0xf0] }
  0xc2   :  { %v1843_v55 = vadd.f32 %v837_v24, %v729_v54  ;;  %767 = vmatmul.bf16.gmra.mxu1 %v1132_v51  ;;  %1334 = vmatmul.msk.bf16.vlgmr.msra.gmra.mxu3 %vm539_vm0, %v1220_v52 }
  0xc5   :  { %v1852_v58 = vpop.f32.mrf.mxu3  ;;  %v844_v59 = vpop.f32.mrf.mxu2 }
  0xc6   :  { %v621_v60 = vpop.f32.mrf.mxu0 }
  0xc7   :  { %v730_v62 = vpop.f32.mrf.mxu1 }
  0xc8   :  { %v731_v63 = vadd.f32 %v730_v62, %v621_v60  ;;  %v1377_v60 = vld [vmem:[%s2115_s0 + $0x140] sm:$0xf0]  ;;  %v1165_v62 = vld [vmem:[%s2115_s0 + $0x144] sm:$0xf0] }
  0xca   :  { %v1854_v0 = vadd.f32 %v839_v35, %v731_v63  ;;  %1329 = vmatmul.msk.bf16.gmra.mxu2 %vm539_vm0, %v1160_v61  ;;  %v1243_v35 = vld [vmem:[%s2115_s0 + $0x1d0] sm:$0xf]  ;;  %v1376_v61 = vld [vmem:[%s2115_s0 + $0x13c] sm:$0xf] }
  0xcb   :  { %v1244_v43 = vor.u32 %v1396_v36, %v1243_v35  ;;  %v1168_v4 = vor.u32 %v1376_v61, %v1165_v62 }
  0xcd   :  { %v1875_v8 = vpop.f32.mrf.mxu3  ;;  %v847_v9 = vpop.f32.mrf.mxu2 }
  0xce   :  { %v624_v12 = vpop.f32.mrf.mxu0 }
  0xcf   :  { %v733_v15 = vpop.f32.mrf.mxu1 }
  0xd0   :  { %v734_v17 = vadd.f32 %v733_v15, %v624_v12  ;;  %v1384_v12 = vld [vmem:[%s2115_s0 + $0x178] sm:$0xf0] }
  0xd1   :  { %663 = vmatmul.bf16.gmra.mxu0 %v1140_v11  ;;  %v1195_v11 = vld [vmem:[%s2115_s0 + $0x170] sm:$0xf] }
  0xd2   :  { %v1877_v18 = vadd.f32 %v842_v48, %v734_v17  ;;  %772 = vmatmul.bf16.gmra.mxu1 %v1144_v13  ;;  %1335 = vmatmul.msk.bf16.gmra.mxu3 %vm539_vm0, %v1232_v14  ;;  %v1183_v48 = vld [vmem:[%s2115_s0 + $0x158] sm:$0xf]  ;;  %v1196_v19 = vor.u32 %v1384_v12, %v1195_v11 }
  0xd3   :  { %v1184_v53 = vor.u32 %v1381_v49, %v1183_v48 }
  0xd5   :  { %v1886_v21 = vpop.f32.mrf.mxu3  ;;  %v849_v22 = vpop.f32.mrf.mxu2 }
  0xd6   :  { %v626_v24 = vpop.f32.mrf.mxu0 }
  0xd7   :  { %v735_v26 = vpop.f32.mrf.mxu1 }
  0xd8   :  { %v736_v27 = vadd.f32 %v735_v26, %v626_v24  ;;  %v1380_v26 = vld [vmem:[%s2115_s0 + $0x158] sm:$0xf0] }
  0xda   :  { %v1888_v28 = vadd.f32 %v844_v59, %v736_v27  ;;  %1330 = vmatmul.msk.bf16.gmra.mxu2 %vm539_vm0, %v1172_v25  ;;  %v1163_v59 = vld [vmem:[%s2115_s0 + $0x138] sm:$0xf]  ;;  %v1175_v25 = vld [vmem:[%s2115_s0 + $0x150] sm:$0xf]  ;;  %v1379_v27 = vld [vmem:[%s2115_s0 + $0x154] sm:$0xf] }
  0xdb   :  { %v1164_v2 = vor.u32 %v1377_v60, %v1163_v59  ;;  %v1176_v35 = vor.u32 %v1380_v26, %v1175_v25 }
  0xdd   :  { %v1909_v37 = vpop.f32.mrf.mxu3  ;;  %v852_v38 = vpop.f32.mrf.mxu2 }
  0xde   :  { %v629_v41 = vpop.f32.mrf.mxu0 }
  0xdf   :  { %v738_v44 = vpop.f32.mrf.mxu1 }
  0xe0   :  { %v739_v45 = vadd.f32 %v738_v44, %v629_v41  ;;  %v1387_v44 = vld [vmem:[%s2115_s0 + $0x190] sm:$0xf0] }
  0xe1   :  { %668 = vmatmul.bf16.gmra.mxu0 %v1152_v39 }
  0xe2   :  { %v1911_v46 = vadd.f32 %v847_v9, %v739_v45  ;;  %777 = vmatmul.bf16.gmra.mxu1 %v1156_v42  ;;  %1336 = vmatmul.msk.bf16.gmra.mxu3 %vm539_vm0, %v1244_v43  ;;  %v1207_v43 = vld [vmem:[%s2115_s0 + $0x188] sm:$0xf] }
  0xe5   :  { %v1920_v50 = vpop.f32.mrf.mxu3  ;;  %v854_v51 = vpop.f32.mrf.mxu2 }
  0xe6   :  { %v631_v52 = vpop.f32.mrf.mxu0 }
  0xe7   :  { %v740_v54 = vpop.f32.mrf.mxu1 }
  0xe8   :  { %v741_v56 = vadd.f32 %v740_v54, %v631_v52 }
  0xea   :  { %v1922_v57 = vadd.f32 %v849_v22, %v741_v56  ;;  %1331 = vmatmul.msk.bf16.gmra.mxu2 %vm539_vm0, %v1184_v53 }
  0xed   :  { %v1937_v63 = vpop.f32.mrf.mxu3  ;;  %v857_v1 = vpop.f32.mrf.mxu2 }
  0xee   :  { %v634_v3 = vpop.f32.mrf.mxu0 }
  0xef   :  { %v743_v5 = vpop.f32.mrf.mxu1 }
  0xf0   :  { %v744_v6 = vadd.f32 %v743_v5, %v634_v3 }
  0xf1   :  { %673 = vmatmul.bf16.gmra.mxu0 %v1164_v2 }
  0xf2   :  { %v1939_v9 = vadd.f32 %v852_v38, %v744_v6  ;;  %782 = vmatmul.bf16.gmra.mxu1 %v1168_v4  ;;  %v1180_v38 = vor.u32 %v1379_v27, %v1177_v29 }
  0xf4   :  { %v927_v13 = vmax.f32 %v1777_v7, %v1939_v9 }
  0xf5   :  { %v1949_v14 = vpop.f32.mrf.mxu3  ;;  %v859_v15 = vpop.f32.mrf.mxu2 }
  0xf6   :  { %v636_v17 = vpop.f32.mrf.mxu0 }
  0xf7   :  { %v745_v20 = vpop.f32.mrf.mxu1 }
  0xf8   :  { %v746_v22 = vadd.f32 %v745_v20, %v636_v17 }
  0xfa   :  { %v1951_v24 = vadd.f32 %v854_v51, %v746_v22  ;;  %1332 = vmatmul.msk.bf16.gmra.mxu2 %vm539_vm0, %v1196_v19  ;;  %v1208_v51 = vor.u32 %v1387_v44, %v1207_v43 }
  0xfc   :  { %v930_v30 = vmax.f32 %v1787_v16, %v1951_v24 }
  0xfd   :  { %v1968_v32 = vpop.f32.mrf.mxu3  ;;  %v862_v33 = vpop.f32.mrf.mxu2 }
  0xfe   :  { %v639_v36 = vpop.f32.mrf.mxu0 }
  0xff   :  { %v748_v39 = vpop.f32.mrf.mxu1 }
 0x100   :  { %v749_v41 = vadd.f32 %v748_v39, %v639_v36 }
 0x101   :  { %678 = vmatmul.bf16.gmra.mxu0 %v1176_v35 }
 0x102   :  { %v1970_v42 = vadd.f32 %v857_v1, %v749_v41  ;;  %787 = vmatmul.bf16.gmra.mxu1 %v1180_v38 }
 0x104   :  { %v933_v45 = vmax.f32 %v1810_v31, %v1970_v42 }
 0x105   :  { %v864_v48 = vpop.f32.mrf.mxu2  ;;  %v1980_v52 = vpop.f32.mrf.mxu3 }
 0x106   :  { %v641_v49 = vpop.f32.mrf.mxu0 }
 0x107   :  { %v750_v53 = vpop.f32.mrf.mxu1 }
 0x108   :  { %v751_v54 = vadd.f32 %v750_v53, %v641_v49 }
 0x10a   :  { %v1982_v56 = vadd.f32 %v859_v15, %v751_v54  ;;  %1333 = vmatmul.msk.bf16.gmra.mxu2 %vm539_vm0, %v1208_v51 }
 0x10c   :  { %v936_v59 = vmax.f32 %v1820_v40, %v1982_v56 }
 0x10d   :  { %v867_v60 = vpop.f32.mrf.mxu2  ;;  %v1987_v2 = vpop.f32.mrf.mxu3 }
 0x10e   :  { %v644_v61 = vpop.f32.mrf.mxu0 }
 0x10f   :  { %v753_v62 = vpop.f32.mrf.mxu1 }
 0x110   :  { %v754_v1 = vadd.f32 %v753_v62, %v644_v61 }
 0x112   :  { %v1989_v3 = vadd.f32 %v862_v33, %v754_v1 }
 0x114   :  { %v939_v4 = vmax.f32 %v1843_v55, %v1989_v3 }
 0x115   :  { %v869_v5 = vpop.f32.mrf.mxu2  ;;  %v1995_v17 = vpop.f32.mrf.mxu3 }
 0x116   :  { %v646_v6 = vpop.f32.mrf.mxu0  ;;  %v804_v42 = vadd.f32 %v1995_v17, %v1852_v58 }
 0x117   :  { %v755_v11 = vpop.f32.mrf.mxu1 }
 0x118   :  { %v756_v12 = vadd.f32 %v755_v11, %v646_v6 }
 0x11a   :  { %v1993_v15 = vadd.f32 %v864_v48, %v756_v12 }
 0x11c   :  { %v942_v19 = vmax.f32 %v1854_v0, %v1993_v15 }
 0x11d   :  { %v872_v20 = vpop.f32.mrf.mxu2  ;;  %v805_v33 = vpop.f32.mrf.mxu3 }
 0x11e   :  { %v649_v22 = vpop.f32.mrf.mxu0  ;;  %v806_v56 = vadd.f32 %v805_v33, %v1875_v8 }
 0x11f   :  { %v758_v25 = vpop.f32.mrf.mxu1 }
 0x120   :  { %v759_v26 = vadd.f32 %v758_v25, %v649_v22 }
 0x122   :  { %v1999_v27 = vadd.f32 %v867_v60, %v759_v26 }
 0x124   :  { %v945_v29 = vmax.f32 %v1877_v18, %v1999_v27 }
 0x125   :  { %v874_v35 = vpop.f32.mrf.mxu2  ;;  %v2007_v49 = vpop.f32.mrf.mxu3 }
 0x126   :  { %v651_v36 = vpop.f32.mrf.mxu0 }
 0x127   :  { %v760_v38 = vpop.f32.mrf.mxu1 }
 0x128   :  { %v761_v39 = vadd.f32 %v760_v38, %v651_v36 }
 0x12a   :  { %v2003_v41 = vadd.f32 %v869_v5, %v761_v39 }
 0x12c   :  { %v948_v43 = vmax.f32 %v1888_v28, %v2003_v41  ;;  %v796_v28 = vadd.f32 %v1968_v32, %v1808_v23 }
 0x12d   :  { %v877_v44 = vpop.f32.mrf.mxu2  ;;  %v2013_v5 = vpop.f32.mrf.mxu3 }
 0x12e   :  { %v654_v48 = vpop.f32.mrf.mxu0 }
 0x12f   :  { %v763_v51 = vpop.f32.mrf.mxu1 }
 0x130   :  { %v764_v53 = vadd.f32 %v763_v51, %v654_v48 }
 0x132   :  { %v2009_v54 = vadd.f32 %v872_v20, %v764_v53 }
 0x134   :  { %v951_v60 = vmax.f32 %v1911_v46, %v2009_v54  ;;  %v799_v46 = vadd.f32 %v1980_v52, %v1818_v34 }
 0x135   :  { %v879_v61 = vpop.f32.mrf.mxu2  ;;  %v2019_v38 = vpop.f32.mrf.mxu3 }
 0x136   :  { %v656_v62 = vpop.f32.mrf.mxu0 }
 0x137   :  { %v765_v1 = vpop.f32.mrf.mxu1 }
 0x138   :  { %v766_v6 = vadd.f32 %v765_v1, %v656_v62 }
 0x13a   :  { %v2015_v11 = vadd.f32 %v874_v35, %v766_v6 }
 0x13d   :  { %v882_v22 = vpop.f32.mrf.mxu2  ;;  %v2031_v6 = vpop.f32.mrf.mxu3 }
 0x13e   :  { %v659_v25 = vpop.f32.mrf.mxu0 }
 0x13f   :  { %v768_v26 = vpop.f32.mrf.mxu1 }
 0x140   :  { %v769_v36 = vadd.f32 %v768_v26, %v659_v25 }
 0x142   :  { %v878_v20 = vadd.f32 %v877_v44, %v769_v36 }
 0x144   :  { %v2024_v39 = vmax.f32 %v927_v13, %v878_v20 }
 0x145   :  { %v884_v48 = vpop.f32.mrf.mxu2 }
 0x146   :  { %v661_v51 = vpop.f32.mrf.mxu0 }
 0x147   :  { %v770_v53 = vpop.f32.mrf.mxu1 }
 0x148   :  { %v771_v35 = vadd.f32 %v770_v53, %v661_v51 }
 0x14a   :  { %v880_v62 = vadd.f32 %v879_v61, %v771_v35  ;;  %v912_v61 = vpop.f32.mrf.mxu3 }
 0x14c   :  { %v2029_v1 = vmax.f32 %v930_v30, %v880_v62 }
 0x14d   :  { %v887_v44 = vpop.f32.mrf.mxu2 }
 0x14e   :  { %v664_v25 = vpop.f32.mrf.mxu0 }
 0x14f   :  { %v773_v26 = vpop.f32.mrf.mxu1 }
 0x150   :  { %v774_v36 = vadd.f32 %v773_v26, %v664_v25  ;;  %v913_v26 = vadd.f32 %v912_v61, %v804_v42 }
 0x152   :  { %v883_v12 = vadd.f32 %v882_v22, %v774_v36  ;;  %v914_v62 = vpop.f32.mrf.mxu3  ;;  %v2052_v36 = vld [vmem:[%s2116_s2] ss:$0 sm:$0xff] }
 0x154   :  { %v2036_v7 = vmax.f32 %v933_v45, %v883_v12 }
 0x155   :  { %v889_v9 = vpop.f32.mrf.mxu2 }
 0x156   :  { %v666_v13 = vpop.f32.mrf.mxu0 }
 0x157   :  { %v775_v20 = vpop.f32.mrf.mxu1 }
 0x158   :  { %v776_v51 = vadd.f32 %v775_v20, %v666_v13  ;;  %v915_v20 = vadd.f32 %v914_v62, %v806_v56  ;;  %v809_v62 = vadd.f32 %v2007_v49, %v1886_v21  ;;  %v794_v21 = vadd.f32 %v1949_v14, %v1785_v10 }
 0x15a   :  { %v885_v16 = vadd.f32 %v884_v48, %v776_v51  ;;  %v917_v13 = vpop.f32.mrf.mxu3 }
 0x15c   :  { %v2041_v24 = vmax.f32 %v936_v59, %v885_v16 }
 0x15d   :  { %v892_v30 = vpop.f32.mrf.mxu2 }
 0x15e   :  { %v669_v53 = vpop.f32.mrf.mxu0 }
 0x15f   :  { %v778_v35 = vpop.f32.mrf.mxu1 }
 0x160   :  { %v779_v22 = vadd.f32 %v778_v35, %v669_v53 }
 0x162   :  { %v888_v25 = vadd.f32 %v887_v44, %v779_v22 }
 0x164   :  { %v940_v45 = vmax.f32 %v939_v4, %v888_v25  ;;  %v918_v25 = vadd.f32 %v917_v13, %v809_v62  ;;  %v814_v13 = vadd.f32 %v2019_v38, %v1920_v50  ;;  %v816_v50 = vadd.f32 %v2031_v6, %v1937_v63 }
 0x165   :  { %v894_v31 = vpop.f32.mrf.mxu2 }
 0x166   :  { %v671_v12 = vpop.f32.mrf.mxu0  ;;  %v941_v59 = vmax.f32 %v940_v45, %v913_v26 }
 0x167   :  { %v780_v48 = vpop.f32.mrf.mxu1 }
 0x168   :  { %v781_v40 = vadd.f32 %v780_v48, %v671_v12  ;;  %v965_v3 = vadd.f32 %v2052_v36, %v941_v59 }
 0x16a   :  { %v890_v44 = vadd.f32 %v889_v9, %v781_v40  ;;  %v975_v51 = vmax.f32 %v965_v3, 0.0  ;;  %v919_v9 = vpop.f32.mrf.mxu3 }
 0x16c   :  { %v943_v55 = vmax.f32 %v942_v19, %v890_v44 }
 0x16d   :  { %v897_v58 = vpop.f32.mrf.mxu2 }
 0x16e   :  { %v944_v4 = vmax.f32 %v943_v55, %v915_v20  ;;  %v674_v17 = vpop.f32.mrf.mxu0 }
 0x16f   :  { %v783_v61 = vpop.f32.mrf.mxu1 }
 0x170   :  { %v966_v8 = vadd.f32 %v2052_v36, %v944_v4  ;;  %v784_v33 = vadd.f32 %v783_v61, %v674_v17 }
 0x172   :  { %v976_v16 = vmax.f32 %v966_v8, 0.0  ;;  %v893_v53 = vadd.f32 %v892_v30, %v784_v33  ;;  %v811_v30 = vadd.f32 %v2013_v5, %v1909_v37  ;;  %v922_v56 = vpop.f32.mrf.mxu3 }
 0x174   :  { %v1428_v35 = vpack.c.bf16 %v976_v16, %v975_v51  ;;  %v946_v0 = vmax.f32 %v945_v29, %v893_v53  ;;  %v920_v49 = vadd.f32 %v919_v9, %v811_v30  ;;  %v2118_v51 = vmax.f32 %v1922_v57, %v2015_v11 }
 0x175   :  { %v899_v22 = vpop.f32.mrf.mxu2  ;;  %v801_v57 = vadd.f32 %v1987_v2, %v1841_v47 }
 0x176   :  { %1441 = vst [vmem:[%s2117_s3 + $0x10] sm:$0xff] %v1428_v35   ;;  %v676_v15 = vpop.f32.mrf.mxu0  ;;  %v947_v45 = vmax.f32 %v946_v0, %v918_v25 }
 0x177   :  { %v785_v19 = vpop.f32.mrf.mxu1 }
 0x178   :  { %v786_v42 = vadd.f32 %v785_v19, %v676_v15  ;;  %v967_v18 = vadd.f32 %v2052_v36, %v947_v45 }
 0x17a   :  { %v895_v12 = vadd.f32 %v894_v31, %v786_v42  ;;  %v977_v44 = vmax.f32 %v967_v18, 0.0  ;;  %v924_v17 = vpop.f32.mrf.mxu3 }
 0x17b   :  { %v925_v54 = vadd.f32 %v924_v17, %v816_v50 }
 0x17c   :  { %v949_v48 = vmax.f32 %v948_v43, %v895_v12 }
 0x17d   :  { %v902_v26 = vpop.f32.mrf.mxu2 }
 0x17e   :  { %v950_v27 = vmax.f32 %v949_v48, %v920_v49  ;;  %v903_v29 = vadd.f32 %v902_v26, %v794_v21  ;;  %v679_v40 = vpop.f32.mrf.mxu0 }
 0x17f   :  { %v788_v59 = vpop.f32.mrf.mxu1 }
 0x180   :  { %v968_v37 = vadd.f32 %v2052_v36, %v950_v27  ;;  %v929_v5 = vmax.f32 %v2024_v39, %v903_v29  ;;  %v789_v31 = vadd.f32 %v788_v59, %v679_v40 }
 0x182   :  { %v978_v10 = vmax.f32 %v968_v37, 0.0  ;;  %v898_v14 = vadd.f32 %v897_v58, %v789_v31  ;;  %v923_v58 = vadd.f32 %v922_v56, %v814_v13  ;;  %v961_v4 = vadd.f32 %v2052_v36, %v929_v5 }
 0x184   :  { %v1433_v41 = vpack.c.bf16 %v978_v10, %v977_v44  ;;  %v952_v39 = vmax.f32 %v951_v60, %v898_v14  ;;  %v971_v60 = vmax.f32 %v961_v4, 0.0 }
 0x185   :  { %v904_v43 = vpop.f32.mrf.mxu2 }
 0x186   :  { %1442 = vst [vmem:[%s2117_s3 + $0x18] sm:$0xff] %v1433_v41   ;;  %v905_v20 = vadd.f32 %v904_v43, %v796_v28  ;;  %v681_v55 = vpop.f32.mrf.mxu0  ;;  %v953_v38 = vmax.f32 %v952_v39, %v923_v58 }
 0x187   :  { %v790_v3 = vpop.f32.mrf.mxu1 }
 0x188   :  { %v932_v23 = vmax.f32 %v2029_v1, %v905_v20  ;;  %v791_v32 = vadd.f32 %v790_v3, %v681_v55  ;;  %v969_v53 = vadd.f32 %v2052_v36, %v953_v38 }
 0x18a   :  { %v962_v61 = vadd.f32 %v2052_v36, %v932_v23  ;;  %v900_v8 = vadd.f32 %v899_v22, %v791_v32  ;;  %v979_v52 = vmax.f32 %v969_v53, 0.0 }
 0x18c   :  { %v972_v33 = vmax.f32 %v962_v61, 0.0  ;;  %v955_v16 = vmax.f32 %v2118_v51, %v900_v8 }
 0x18d   :  { %v907_v1 = vpop.f32.mrf.mxu2 }
 0x18e   :  { %v1418_v35 = vpack.c.bf16 %v972_v33, %v971_v60  ;;  %v956_v9 = vmax.f32 %v955_v16, %v925_v54  ;;  %v908_v63 = vadd.f32 %v907_v1, %v799_v46 }
 0x190   :  { %1419 = vst [vmem:[%s2117_s3] sm:$0xff] %v1418_v35   ;;  %v970_v6 = vadd.f32 %v2052_v36, %v956_v9  ;;  %v935_v34 = vmax.f32 %v2036_v7, %v908_v63 }
 0x192   :  { %v980_v22 = vmax.f32 %v970_v6, 0.0  ;;  %v963_v15 = vadd.f32 %v2052_v36, %v935_v34 }
 0x194   :  { %v1438_v11 = vpack.c.bf16 %v980_v22, %v979_v52  ;;  %v973_v42 = vmax.f32 %v963_v15, 0.0 }
 0x195   :  { %v909_v62 = vpop.f32.mrf.mxu2 }
 0x196   :  { %1443 = vst [vmem:[%s2117_s3 + $0x20] sm:$0xff] %v1438_v11   ;;  %v910_v0 = vadd.f32 %v909_v62, %v801_v57 }
 0x198   :  { %v938_v19 = vmax.f32 %v2041_v24, %v910_v0 }
 0x19a   :  { %v964_v25 = vadd.f32 %v2052_v36, %v938_v19 }
 0x19c   :  { %v974_v7 = vmax.f32 %v964_v25, 0.0 }
 0x19e   :  { %v1423_v30 = vpack.c.bf16 %v974_v7, %v973_v42 }
 0x1a0   :  { %1440 = vst [vmem:[%s2117_s3 + $0x8] sm:$0xff] %v1423_v30  }

// kernel: neural_net_forward.6
= control target key start
LH: loop header
LB: loop body
LE: loop exit
PB: predicated region body
PF: predicated region fallthrough
CT: control target
= control target key end

     0   :  { %vm551_vm0 = vcmask 523264   ;;  %s1729_s1 = inlined_call_operand.vmem [shape: bf16[576,128], index: 1, kind: input, shape index: {}]   ;;  %s1730_s0 = inlined_call_operand.vmem [shape: bf16[4,32,576], index: 0, kind: input, shape index: {}]   ;;  %s1731_s2 = inlined_call_operand.vmem [shape: f32[1,128], index: 2, kind: input, shape index: {}]   ;;  %s1732_s3 = inlined_call_operand.vmem [shape: bf16[32,128], index: 3, kind: output, shape index: {}]  }
   0x1   :  { %v1216_v0 = vld [vmem:[%s1729_s1 + $0x38] sm:$0xff]  ;;  %v1215_v1 = vld [vmem:[%s1729_s1 + $0x30] sm:$0xff]  ;;  %v1214_v2 = vld [vmem:[%s1729_s1 + $0x28] sm:$0xff] }
   0x2   :  { %1256 = vmatpush.bf16.msra.mxu1 %v1216_v0  ;;  %1257 = vmatpush.bf16.msra.mxu2 %v1216_v0  ;;  %v1213_v3 = vld [vmem:[%s1729_s1 + $0x20] sm:$0xff]  ;;  %v1212_v4 = vld [vmem:[%s1729_s1 + $0x18] sm:$0xff]  ;;  %v1211_v5 = vld [vmem:[%s1729_s1 + $0x10] sm:$0xff] }
   0x3   :  { %1258 = vmatpush.bf16.msra.mxu3 %v1216_v0  ;;  %576 = vmatpush.bf16.msra.mxu0 %v1216_v0  ;;  %v1210_v6 = vld [vmem:[%s1729_s1 + $0x8] sm:$0xff]  ;;  %v1209_v7 = vld [vmem:[%s1729_s1] sm:$0xff]  ;;  %v899_v8 = vld [vmem:[%s1730_s0 + $0x50] sm:$0xf] }
   0x4   :  { %v1181_v9 = vld [vmem:[%s1730_s0 + $0x60] sm:$0xf0]  ;;  %v939_v10 = vld [vmem:[%s1730_s0 + $0xa0] sm:$0xf]  ;;  %v1191_v11 = vld [vmem:[%s1730_s0 + $0xb0] sm:$0xf0] }
   0x5   :  { %v979_v12 = vld [vmem:[%s1730_s0 + $0xf0] sm:$0xf]  ;;  %v1201_v13 = vld [vmem:[%s1730_s0 + $0x100] sm:$0xf0]  ;;  %v859_v14 = vld [vmem:[%s1730_s0] sm:$0xf]  ;;  %v900_v18 = vor.u32 %v1181_v9, %v899_v8  ;;  %v940_v19 = vor.u32 %v1191_v11, %v939_v10 }
   0x6   :  { %1259 = vmatpush.bf16.msra.mxu1 %v1215_v1  ;;  %1260 = vmatpush.bf16.msra.mxu2 %v1215_v1  ;;  %v1171_v15 = vld [vmem:[%s1730_s0 + $0x10] sm:$0xf0]  ;;  %v1232_v16 = vld [vmem:[%s1729_s1 + $0xb8] sm:$0xff]  ;;  %v980_v20 = vor.u32 %v1201_v13, %v979_v12  ;;  %v1230_v28 = vld [vmem:[%s1729_s1 + $0xa8] sm:$0xff] }
   0x7   :  { %1261 = vmatpush.bf16.msra.mxu3 %v1215_v1  ;;  %577 = vmatpush.bf16.msra.mxu0 %v1215_v1  ;;  %v1224_v17 = vld [vmem:[%s1729_s1 + $0x78] sm:$0xff]  ;;  %v860_v21 = vor.u32 %v1171_v15, %v859_v14  ;;  %v1231_v24 = vld [vmem:[%s1729_s1 + $0xb0] sm:$0xff]  ;;  %v1222_v29 = vld [vmem:[%s1729_s1 + $0x68] sm:$0xff] }
   0x8   :  { %v1240_v22 = vld [vmem:[%s1729_s1 + $0xf8] sm:$0xff]  ;;  %v1223_v25 = vld [vmem:[%s1729_s1 + $0x70] sm:$0xff]  ;;  %v1238_v30 = vld [vmem:[%s1729_s1 + $0xe8] sm:$0xff] }
   0x9   :  { %v1244_v23 = vld [vmem:[%s1729_s1 + $0x118] sm:$0xff]  ;;  %v1239_v26 = vld [vmem:[%s1729_s1 + $0xf0] sm:$0xff]  ;;  %v1242_v31 = vld [vmem:[%s1729_s1 + $0x108] sm:$0xff] }
   0xa   :  { %1262 = vmatpush.bf16.msra.mxu1 %v1214_v2  ;;  %1263 = vmatpush.bf16.msra.mxu2 %v1214_v2  ;;  %v1243_v27 = vld [vmem:[%s1729_s1 + $0x110] sm:$0xff]  ;;  %v1229_v32 = vld [vmem:[%s1729_s1 + $0xa0] sm:$0xff]  ;;  %v919_v35 = vld [vmem:[%s1730_s0 + $0x78] sm:$0xf] }
   0xb   :  { %1264 = vmatpush.bf16.msra.mxu3 %v1214_v2  ;;  %578 = vmatpush.bf16.msra.mxu0 %v1214_v2  ;;  %v1221_v33 = vld [vmem:[%s1729_s1 + $0x60] sm:$0xff]  ;;  %v1186_v36 = vld [vmem:[%s1730_s0 + $0x88] sm:$0xf0]  ;;  %v959_v37 = vld [vmem:[%s1730_s0 + $0xc8] sm:$0xf] }
   0xc   :  { %v1237_v34 = vld [vmem:[%s1729_s1 + $0xe0] sm:$0xff]  ;;  %v1196_v38 = vld [vmem:[%s1730_s0 + $0xd8] sm:$0xf0]  ;;  %v999_v39 = vld [vmem:[%s1730_s0 + $0x118] sm:$0xf]  ;;  %v920_v46 = vor.u32 %v1186_v36, %v919_v35 }
   0xd   :  { %v1206_v40 = vld [vmem:[%s1730_s0 + $0x128] sm:$0xf0]  ;;  %v879_v41 = vld [vmem:[%s1730_s0 + $0x28] sm:$0xf]  ;;  %v1176_v42 = vld [vmem:[%s1730_s0 + $0x38] sm:$0xf0]  ;;  %v960_v47 = vor.u32 %v1196_v38, %v959_v37 }
   0xe   :  { %1265 = vmatpush.bf16.msra.mxu1 %v1213_v3  ;;  %1266 = vmatpush.bf16.msra.mxu2 %v1213_v3  ;;  %v1241_v43 = vld [vmem:[%s1729_s1 + $0x100] sm:$0xff]  ;;  %v1228_v44 = vld [vmem:[%s1729_s1 + $0x98] sm:$0xff]  ;;  %v1000_v48 = vor.u32 %v1206_v40, %v999_v39  ;;  %v880_v49 = vor.u32 %v1176_v42, %v879_v41  ;;  %v1227_v51 = vld [vmem:[%s1729_s1 + $0x90] sm:$0xff] }
   0xf   :  { %1267 = vmatpush.bf16.msra.mxu3 %v1213_v3  ;;  %579 = vmatpush.bf16.msra.mxu0 %v1213_v3  ;;  %v1220_v45 = vld [vmem:[%s1729_s1 + $0x58] sm:$0xff]  ;;  %v1219_v52 = vld [vmem:[%s1729_s1 + $0x50] sm:$0xff]  ;;  %v1226_v54 = vld [vmem:[%s1729_s1 + $0x88] sm:$0xff] }
  0x10   :  { %v1236_v50 = vld [vmem:[%s1729_s1 + $0xd8] sm:$0xff]  ;;  %v1235_v53 = vld [vmem:[%s1729_s1 + $0xd0] sm:$0xff]  ;;  %v1218_v55 = vld [vmem:[%s1729_s1 + $0x48] sm:$0xff] }
  0x11   :  { %v1234_v56 = vld [vmem:[%s1729_s1 + $0xc8] sm:$0xff]  ;;  %v1225_v57 = vld [vmem:[%s1729_s1 + $0x80] sm:$0xff]  ;;  %v861_v61 = vld [vmem:[%s1730_s0 + $0x14] sm:$0xf0] }
  0x12   :  { %1268 = vmatpush.bf16.msra.mxu1 %v1212_v4  ;;  %1269 = vmatpush.bf16.msra.mxu2 %v1212_v4  ;;  %v1217_v58 = vld [vmem:[%s1729_s1 + $0x40] sm:$0xff]  ;;  %v867_v62 = vld [vmem:[%s1730_s0 + $0x8] sm:$0xf]  ;;  %v1172_v63 = vld [vmem:[%s1730_s0 + $0x18] sm:$0xf0] }
  0x13   :  { %1270 = vmatpush.bf16.msra.mxu3 %v1212_v4  ;;  %580 = vmatpush.bf16.msra.mxu0 %v1212_v4  ;;  %v1233_v59 = vld [vmem:[%s1729_s1 + $0xc0] sm:$0xff]  ;;  %v1170_v0 = vld [vmem:[%s1730_s0 + $0xc] sm:$0xf]  ;;  %v875_v2 = vld [vmem:[%s1730_s0 + $0x10] sm:$0xf] }
  0x14   :  { %v1169_v60 = vld [vmem:[%s1730_s0 + $0x4] sm:$0xf]  ;;  %v869_v1 = vld [vmem:[%s1730_s0 + $0x1c] sm:$0xf0]  ;;  %v1174_v8 = vld [vmem:[%s1730_s0 + $0x2c] sm:$0xf] }
  0x15   :  { %v1173_v3 = vld [vmem:[%s1730_s0 + $0x20] sm:$0xf0]  ;;  %v864_v4 = vor.u32 %v1169_v60, %v861_v61  ;;  %v881_v9 = vld [vmem:[%s1730_s0 + $0x3c] sm:$0xf0]  ;;  %v887_v10 = vld [vmem:[%s1730_s0 + $0x30] sm:$0xf] }
  0x16   :  { %1271 = vmatpush.bf16.msra.mxu1 %v1211_v5  ;;  %1272 = vmatpush.bf16.msra.mxu2 %v1211_v5  ;;  %v1177_v11 = vld [vmem:[%s1730_s0 + $0x40] sm:$0xf0]  ;;  %v1175_v12 = vld [vmem:[%s1730_s0 + $0x34] sm:$0xf]  ;;  %v889_v13 = vld [vmem:[%s1730_s0 + $0x44] sm:$0xf0] }
  0x17   :  { %1273 = vmatpush.bf16.msra.mxu3 %v1211_v5  ;;  %581 = vmatpush.bf16.msra.mxu0 %v1211_v5  ;;  %v868_v5 = vor.u32 %v1172_v63, %v867_v62  ;;  %v895_v14 = vld [vmem:[%s1730_s0 + $0x38] sm:$0xf]  ;;  %v1178_v15 = vld [vmem:[%s1730_s0 + $0x48] sm:$0xf0]  ;;  %v1187_v35 = vld [vmem:[%s1730_s0 + $0x90] sm:$0xf0] }
  0x18   :  { %v1185_v36 = vld [vmem:[%s1730_s0 + $0x84] sm:$0xf]  ;;  %v929_v37 = vld [vmem:[%s1730_s0 + $0x94] sm:$0xf0]  ;;  %v935_v38 = vld [vmem:[%s1730_s0 + $0x88] sm:$0xf] }
  0x19   :  { %v1188_v39 = vld [vmem:[%s1730_s0 + $0x98] sm:$0xf0]  ;;  %v932_v42 = vor.u32 %v1185_v36, %v929_v37  ;;  %v1195_v60 = vld [vmem:[%s1730_s0 + $0xd4] sm:$0xf]  ;;  %v969_v61 = vld [vmem:[%s1730_s0 + $0xe4] sm:$0xf0] }
  0x1a   :  { %1274 = vmatpush.bf16.msra.mxu1 %v1210_v6  ;;  %1275 = vmatpush.bf16.msra.mxu2 %v1210_v6  ;;  %v975_v62 = vld [vmem:[%s1730_s0 + $0xd8] sm:$0xf]  ;;  %v1198_v63 = vld [vmem:[%s1730_s0 + $0xe8] sm:$0xf0] }
  0x1b   :  { %1276 = vmatpush.bf16.msra.mxu3 %v1210_v6  ;;  %582 = vmatpush.bf16.msra.mxu0 %v1210_v6  ;;  %v872_v6 = vor.u32 %v1170_v0, %v869_v1 }
  0x1e   :  { %1277 = vmatpush.bf16.msra.mxu1 %v1209_v7  ;;  %1278 = vmatpush.bf16.msra.mxu2 %v1209_v7 }
  0x1f   :  { %1279 = vmatpush.bf16.msra.mxu3 %v1209_v7  ;;  %583 = vmatpush.bf16.msra.mxu0 %v1209_v7  ;;  %v876_v7 = vor.u32 %v1173_v3, %v875_v2  ;;  %v972_v2 = vor.u32 %v1195_v60, %v969_v61  ;;  %v976_v3 = vor.u32 %v1198_v63, %v975_v62 }
  0x21   :  { %594 = vmatmul.bf16.vlgmr.msra.gmra.mxu1 %v900_v18  ;;  %604 = vmatmul.bf16.vlgmr.msra.gmra.mxu2 %v940_v19  ;;  %v892_v18 = vor.u32 %v1175_v12, %v889_v13  ;;  %v896_v19 = vor.u32 %v1178_v15, %v895_v14 }
  0x22   :  { %674 = vmatpush.bf16.msrb.mxu2 %v1232_v16  ;;  %625 = vmatpush.bf16.msrb.mxu1 %v1224_v17  ;;  %v884_v16 = vor.u32 %v1174_v8, %v881_v9  ;;  %v888_v17 = vor.u32 %v1177_v11, %v887_v10  ;;  %v1200_v8 = vld [vmem:[%s1730_s0 + $0xfc] sm:$0xf]  ;;  %v989_v9 = vld [vmem:[%s1730_s0 + $0x10c] sm:$0xf0]  ;;  %v995_v10 = vld [vmem:[%s1730_s0 + $0x100] sm:$0xf] }
  0x23   :  { %614 = vmatmul.bf16.vlgmr.msra.gmra.mxu3 %v980_v20  ;;  %584 = vmatmul.bf16.vlgmr.msra.gmra.mxu0 %v860_v21  ;;  %v1179_v20 = vld [vmem:[%s1730_s0 + $0x54] sm:$0xf]  ;;  %v901_v21 = vld [vmem:[%s1730_s0 + $0x64] sm:$0xf0]  ;;  %v992_v15 = vor.u32 %v1200_v8, %v989_v9 }
  0x24   :  { %723 = vmatpush.bf16.msrb.mxu3 %v1240_v22  ;;  %776 = vmatpush.bf16.msrb.mxu0 %v1244_v23  ;;  %v907_v22 = vld [vmem:[%s1730_s0 + $0x58] sm:$0xf]  ;;  %v1182_v23 = vld [vmem:[%s1730_s0 + $0x68] sm:$0xf0]  ;;  %v1203_v11 = vld [vmem:[%s1730_s0 + $0x110] sm:$0xf0] }
  0x26   :  { %675 = vmatpush.bf16.msrb.mxu2 %v1231_v24  ;;  %626 = vmatpush.bf16.msrb.mxu1 %v1223_v25  ;;  %v1180_v24 = vld [vmem:[%s1730_s0 + $0x5c] sm:$0xf]  ;;  %v909_v25 = vld [vmem:[%s1730_s0 + $0x6c] sm:$0xf0] }
  0x28   :  { %724 = vmatpush.bf16.msrb.mxu3 %v1239_v26  ;;  %777 = vmatpush.bf16.msrb.mxu0 %v1243_v27  ;;  %v915_v26 = vld [vmem:[%s1730_s0 + $0x60] sm:$0xf]  ;;  %v1183_v27 = vld [vmem:[%s1730_s0 + $0x70] sm:$0xf0] }
  0x2a   :  { %676 = vmatpush.bf16.msrb.mxu2 %v1230_v28  ;;  %627 = vmatpush.bf16.msrb.mxu1 %v1222_v29  ;;  %v904_v28 = vor.u32 %v1179_v20, %v901_v21  ;;  %v908_v29 = vor.u32 %v1182_v23, %v907_v22  ;;  %v1204_v22 = vld [vmem:[%s1730_s0 + $0x11c] sm:$0xf]  ;;  %v1001_v23 = vld [vmem:[%s1730_s0 + $0x12c] sm:$0xf0] }
  0x2c   :  { %725 = vmatpush.bf16.msrb.mxu3 %v1238_v30  ;;  %778 = vmatpush.bf16.msrb.mxu0 %v1242_v31  ;;  %v912_v30 = vor.u32 %v1180_v24, %v909_v25  ;;  %v916_v31 = vor.u32 %v1183_v27, %v915_v26  ;;  %v1007_v24 = vld [vmem:[%s1730_s0 + $0x120] sm:$0xf]  ;;  %v1207_v25 = vld [vmem:[%s1730_s0 + $0x130] sm:$0xf0]  ;;  %v1205_v26 = vld [vmem:[%s1730_s0 + $0x124] sm:$0xf] }
  0x2d   :  { %v1009_v27 = vld [vmem:[%s1730_s0 + $0x134] sm:$0xf0] }
  0x2e   :  { %677 = vmatpush.bf16.msrb.mxu2 %v1229_v32  ;;  %628 = vmatpush.bf16.msrb.mxu1 %v1221_v33  ;;  %v1184_v32 = vld [vmem:[%s1730_s0 + $0x7c] sm:$0xf]  ;;  %v921_v33 = vld [vmem:[%s1730_s0 + $0x8c] sm:$0xf0] }
  0x2f   :  { %v924_v40 = vor.u32 %v1184_v32, %v921_v33  ;;  %v1004_v32 = vor.u32 %v1204_v22, %v1001_v23  ;;  %v1008_v33 = vor.u32 %v1207_v25, %v1007_v24 }
  0x30   :  { %726 = vmatpush.bf16.msrb.mxu3 %v1237_v34  ;;  %779 = vmatpush.bf16.msrb.mxu0 %v1241_v43  ;;  %v927_v34 = vld [vmem:[%s1730_s0 + $0x80] sm:$0xf]  ;;  %v936_v43 = vor.u32 %v1188_v39, %v935_v38 }
  0x31   :  { %599 = vmatmul.bf16.gmra.mxu1 %v920_v46  ;;  %609 = vmatmul.bf16.gmra.mxu2 %v960_v47  ;;  %v928_v41 = vor.u32 %v1187_v35, %v927_v34  ;;  %v947_v46 = vld [vmem:[%s1730_s0 + $0xa8] sm:$0xf]  ;;  %v1192_v47 = vld [vmem:[%s1730_s0 + $0xb8] sm:$0xf0]  ;;  %v1012_v35 = vor.u32 %v1205_v26, %v1009_v27 }
  0x32   :  { %678 = vmatpush.bf16.msrb.mxu2 %v1228_v44  ;;  %629 = vmatpush.bf16.msrb.mxu1 %v1220_v45  ;;  %v1189_v44 = vld [vmem:[%s1730_s0 + $0xa4] sm:$0xf]  ;;  %v941_v45 = vld [vmem:[%s1730_s0 + $0xb4] sm:$0xf0] }
  0x33   :  { %619 = vmatmul.bf16.gmra.mxu3 %v1000_v48  ;;  %589 = vmatmul.bf16.gmra.mxu0 %v880_v49  ;;  %v1190_v48 = vld [vmem:[%s1730_s0 + $0xac] sm:$0xf]  ;;  %v949_v49 = vld [vmem:[%s1730_s0 + $0xbc] sm:$0xf0] }
  0x34   :  { %727 = vmatpush.bf16.msrb.mxu3 %v1236_v50  ;;  %v955_v50 = vld [vmem:[%s1730_s0 + $0xb0] sm:$0xf] }
  0x36   :  { %679 = vmatpush.bf16.msrb.mxu2 %v1227_v51  ;;  %630 = vmatpush.bf16.msrb.mxu1 %v1219_v52  ;;  %v1193_v51 = vld [vmem:[%s1730_s0 + $0xc0] sm:$0xf0]  ;;  %v944_v52 = vor.u32 %v1189_v44, %v941_v45 }
  0x38   :  { %728 = vmatpush.bf16.msrb.mxu3 %v1235_v53  ;;  %v948_v53 = vor.u32 %v1192_v47, %v947_v46 }
  0x3a   :  { %680 = vmatpush.bf16.msrb.mxu2 %v1226_v54  ;;  %631 = vmatpush.bf16.msrb.mxu1 %v1218_v55  ;;  %v952_v54 = vor.u32 %v1190_v48, %v949_v49  ;;  %v956_v55 = vor.u32 %v1193_v51, %v955_v50 }
  0x3c   :  { %729 = vmatpush.bf16.msrb.mxu3 %v1234_v56  ;;  %v1194_v56 = vld [vmem:[%s1730_s0 + $0xcc] sm:$0xf] }
  0x3e   :  { %681 = vmatpush.bf16.msrb.mxu2 %v1225_v57  ;;  %632 = vmatpush.bf16.msrb.mxu1 %v1217_v58  ;;  %v961_v57 = vld [vmem:[%s1730_s0 + $0xdc] sm:$0xf0]  ;;  %v967_v58 = vld [vmem:[%s1730_s0 + $0xd0] sm:$0xf] }
  0x3f   :  { %v964_v0 = vor.u32 %v1194_v56, %v961_v57 }
  0x40   :  { %730 = vmatpush.bf16.msrb.mxu3 %v1233_v59  ;;  %v1197_v59 = vld [vmem:[%s1730_s0 + $0xe0] sm:$0xf0] }
  0x41   :  { %633 = vmatmul.bf16.vlgmr.msrb.gmra.mxu1 %v864_v4  ;;  %682 = vmatmul.bf16.vlgmr.msrb.gmra.mxu2 %v868_v5  ;;  %v968_v1 = vor.u32 %v1197_v59, %v967_v58  ;;  %v1199_v4 = vld [vmem:[%s1730_s0 + $0xf4] sm:$0xf]  ;;  %v981_v5 = vld [vmem:[%s1730_s0 + $0x104] sm:$0xf0] }
  0x42   :  { %v984_v12 = vor.u32 %v1199_v4, %v981_v5 }
  0x43   :  { %731 = vmatmul.bf16.vlgmr.msrb.gmra.mxu3 %v872_v6  ;;  %1161 = vmatmul.msk.bf16.vlgmr.msrb.gmra.mxu0 %vm551_vm0, %v876_v7  ;;  %v987_v6 = vld [vmem:[%s1730_s0 + $0xf8] sm:$0xf]  ;;  %v1202_v7 = vld [vmem:[%s1730_s0 + $0x108] sm:$0xf0] }
  0x44   :  { %v988_v13 = vor.u32 %v1202_v7, %v987_v6 }
  0x51   :  { %638 = vmatmul.bf16.gmra.mxu1 %v884_v16  ;;  %687 = vmatmul.bf16.gmra.mxu2 %v888_v17  ;;  %v996_v16 = vor.u32 %v1203_v11, %v995_v10 }
  0x53   :  { %736 = vmatmul.bf16.gmra.mxu3 %v892_v18  ;;  %1162 = vmatmul.msk.bf16.gmra.mxu0 %vm551_vm0, %v896_v19 }
  0x61   :  { %643 = vmatmul.bf16.gmra.mxu1 %v904_v28  ;;  %692 = vmatmul.bf16.gmra.mxu2 %v908_v29  ;;  %v1015_v28 = vld [vmem:[%s1730_s0 + $0x128] sm:$0xf]  ;;  %v1208_v29 = vld [vmem:[%s1730_s0 + $0x138] sm:$0xf0] }
  0x62   :  { %v1016_v36 = vor.u32 %v1208_v29, %v1015_v28 }
  0x63   :  { %741 = vmatmul.bf16.gmra.mxu3 %v912_v30  ;;  %1163 = vmatmul.msk.bf16.gmra.mxu0 %vm551_vm0, %v916_v31 }
  0x71   :  { %648 = vmatmul.bf16.gmra.mxu1 %v924_v40  ;;  %697 = vmatmul.bf16.gmra.mxu2 %v928_v41 }
  0x73   :  { %746 = vmatmul.bf16.gmra.mxu3 %v932_v42  ;;  %1164 = vmatmul.msk.bf16.gmra.mxu0 %vm551_vm0, %v936_v43 }
  0x81   :  { %653 = vmatmul.bf16.gmra.mxu1 %v944_v52  ;;  %702 = vmatmul.bf16.gmra.mxu2 %v948_v53 }
  0x83   :  { %751 = vmatmul.bf16.gmra.mxu3 %v952_v54  ;;  %1165 = vmatmul.msk.bf16.gmra.mxu0 %vm551_vm0, %v956_v55 }
  0x91   :  { %658 = vmatmul.bf16.gmra.mxu1 %v964_v0  ;;  %707 = vmatmul.bf16.gmra.mxu2 %v968_v1 }
  0x93   :  { %756 = vmatmul.bf16.gmra.mxu3 %v972_v2  ;;  %1166 = vmatmul.msk.bf16.gmra.mxu0 %vm551_vm0, %v976_v3 }
  0x9e   :  { %v1631_v14 = vpop.f32.mrf.mxu1 }
  0xa0   :  { %v585_v17 = vpop.f32.mrf.mxu0 }
  0xa1   :  { %663 = vmatmul.bf16.gmra.mxu1 %v984_v12  ;;  %712 = vmatmul.bf16.gmra.mxu2 %v988_v13 }
  0xa3   :  { %761 = vmatmul.bf16.gmra.mxu3 %v992_v15  ;;  %1167 = vmatmul.msk.bf16.gmra.mxu0 %vm551_vm0, %v996_v16 }
  0xa4   :  { %v1634_v18 = vpop.f32.mrf.mxu2 }
  0xa6   :  { %v1636_v19 = vpop.f32.mrf.mxu3  ;;  %v1638_v20 = vpop.f32.mrf.mxu1 }
  0xa8   :  { %v587_v21 = vpop.f32.mrf.mxu0 }
  0xac   :  { %v1664_v30 = vpop.f32.mrf.mxu2 }
  0xae   :  { %v1666_v31 = vpop.f32.mrf.mxu3  ;;  %v1668_v34 = vpop.f32.mrf.mxu1 }
  0xb0   :  { %v590_v37 = vpop.f32.mrf.mxu0 }
  0xb1   :  { %668 = vmatmul.bf16.gmra.mxu1 %v1004_v32  ;;  %717 = vmatmul.bf16.gmra.mxu2 %v1008_v33 }
  0xb3   :  { %766 = vmatmul.bf16.gmra.mxu3 %v1012_v35  ;;  %1168 = vmatmul.msk.bf16.gmra.mxu0 %vm551_vm0, %v1016_v36 }
  0xb4   :  { %v1671_v38 = vpop.f32.mrf.mxu2 }
  0xb6   :  { %v1673_v39 = vpop.f32.mrf.mxu3  ;;  %v1675_v40 = vpop.f32.mrf.mxu1 }
  0xb8   :  { %v592_v41 = vpop.f32.mrf.mxu0 }
  0xbc   :  { %v1677_v42 = vpop.f32.mrf.mxu2 }
  0xbe   :  { %v1679_v43 = vpop.f32.mrf.mxu3  ;;  %v634_v44 = vpop.f32.mrf.mxu1 }
  0xbf   :  { %v635_v45 = vadd.f32 %v634_v44, %v585_v17 }
  0xc0   :  { %v781_v46 = vpop.f32.mrf.mxu0 }
  0xc4   :  { %v683_v47 = vpop.f32.mrf.mxu2 }
  0xc5   :  { %v684_v48 = vadd.f32 %v683_v47, %v635_v45 }
  0xc6   :  { %v732_v49 = vpop.f32.mrf.mxu3  ;;  %v636_v50 = vpop.f32.mrf.mxu1 }
  0xc7   :  { %v733_v51 = vadd.f32 %v732_v49, %v684_v48  ;;  %v637_v52 = vadd.f32 %v636_v50, %v587_v21 }
  0xc8   :  { %v783_v53 = vpop.f32.mrf.mxu0 }
  0xc9   :  { %v1681_v54 = vadd.f32 %v781_v46, %v733_v51 }
  0xcc   :  { %v685_v55 = vpop.f32.mrf.mxu2 }
  0xcd   :  { %v686_v56 = vadd.f32 %v685_v55, %v637_v52 }
  0xce   :  { %v734_v57 = vpop.f32.mrf.mxu3  ;;  %v639_v58 = vpop.f32.mrf.mxu1 }
  0xcf   :  { %v735_v59 = vadd.f32 %v734_v57, %v686_v56  ;;  %v640_v60 = vadd.f32 %v639_v58, %v590_v37 }
  0xd0   :  { %v786_v61 = vpop.f32.mrf.mxu0 }
  0xd1   :  { %v1683_v62 = vadd.f32 %v783_v53, %v735_v59 }
  0xd4   :  { %v688_v63 = vpop.f32.mrf.mxu2 }
  0xd5   :  { %v689_v0 = vadd.f32 %v688_v63, %v640_v60 }
  0xd6   :  { %v737_v1 = vpop.f32.mrf.mxu3  ;;  %v641_v2 = vpop.f32.mrf.mxu1 }
  0xd7   :  { %v738_v3 = vadd.f32 %v737_v1, %v689_v0  ;;  %v642_v4 = vadd.f32 %v641_v2, %v592_v41 }
  0xd8   :  { %v788_v5 = vpop.f32.mrf.mxu0 }
  0xd9   :  { %v1685_v6 = vadd.f32 %v786_v61, %v738_v3 }
  0xdc   :  { %v690_v7 = vpop.f32.mrf.mxu2 }
  0xdd   :  { %v691_v8 = vadd.f32 %v690_v7, %v642_v4 }
  0xde   :  { %v739_v9 = vpop.f32.mrf.mxu3  ;;  %v644_v10 = vpop.f32.mrf.mxu1 }
  0xdf   :  { %v740_v11 = vadd.f32 %v739_v9, %v691_v8  ;;  %v645_v12 = vadd.f32 %v644_v10, %v1631_v14 }
  0xe0   :  { %v791_v13 = vpop.f32.mrf.mxu0 }
  0xe1   :  { %v1688_v15 = vadd.f32 %v788_v5, %v740_v11 }
  0xe4   :  { %v693_v16 = vpop.f32.mrf.mxu2 }
  0xe5   :  { %v694_v17 = vadd.f32 %v693_v16, %v645_v12 }
  0xe6   :  { %v742_v21 = vpop.f32.mrf.mxu3  ;;  %v646_v22 = vpop.f32.mrf.mxu1 }
  0xe7   :  { %v743_v23 = vadd.f32 %v742_v21, %v694_v17  ;;  %v647_v27 = vadd.f32 %v646_v22, %v1638_v20 }
  0xe8   :  { %v793_v24 = vpop.f32.mrf.mxu0 }
  0xe9   :  { %v1690_v25 = vadd.f32 %v791_v13, %v743_v23 }
  0xeb   :  { %v821_v26 = vmax.f32 %v1681_v54, %v1690_v25 }
  0xec   :  { %v695_v28 = vpop.f32.mrf.mxu2 }
  0xed   :  { %v696_v29 = vadd.f32 %v695_v28, %v647_v27 }
  0xee   :  { %v744_v32 = vpop.f32.mrf.mxu3  ;;  %v649_v14 = vpop.f32.mrf.mxu1 }
  0xef   :  { %v745_v33 = vadd.f32 %v744_v32, %v696_v29  ;;  %v650_v35 = vadd.f32 %v649_v14, %v1668_v34 }
  0xf0   :  { %v796_v36 = vpop.f32.mrf.mxu0 }
  0xf1   :  { %v794_v37 = vadd.f32 %v793_v24, %v745_v33 }
  0xf3   :  { %v824_v41 = vmax.f32 %v1683_v62, %v794_v37 }
  0xf4   :  { %v698_v44 = vpop.f32.mrf.mxu2 }
  0xf5   :  { %v699_v45 = vadd.f32 %v698_v44, %v650_v35 }
  0xf6   :  { %v747_v46 = vpop.f32.mrf.mxu3  ;;  %v651_v47 = vpop.f32.mrf.mxu1 }
  0xf7   :  { %v748_v48 = vadd.f32 %v747_v46, %v699_v45  ;;  %v652_v51 = vadd.f32 %v651_v47, %v1675_v40  ;;  %v1280_v46 = vld [vmem:[%s1731_s2] ss:$0 sm:$0xff] }
  0xf8   :  { %v798_v49 = vpop.f32.mrf.mxu0 }
  0xf9   :  { %v1697_v50 = vadd.f32 %v796_v36, %v748_v48 }
  0xfb   :  { %v827_v20 = vmax.f32 %v1685_v6, %v1697_v50 }
  0xfc   :  { %v700_v52 = vpop.f32.mrf.mxu2 }
  0xfd   :  { %v701_v53 = vadd.f32 %v700_v52, %v652_v51 }
  0xfe   :  { %v749_v34 = vpop.f32.mrf.mxu3  ;;  %v654_v54 = vpop.f32.mrf.mxu1 }
  0xff   :  { %v750_v55 = vadd.f32 %v749_v34, %v701_v53  ;;  %v655_v10 = vadd.f32 %v654_v54, %v1634_v18 }
 0x100   :  { %v801_v56 = vpop.f32.mrf.mxu0 }
 0x101   :  { %v1702_v57 = vadd.f32 %v798_v49, %v750_v55 }
 0x103   :  { %v830_v58 = vmax.f32 %v1688_v15, %v1702_v57 }
 0x104   :  { %v703_v59 = vpop.f32.mrf.mxu2 }
 0x105   :  { %v704_v11 = vadd.f32 %v703_v59, %v655_v10 }
 0x106   :  { %v752_v60 = vpop.f32.mrf.mxu3  ;;  %v656_v61 = vpop.f32.mrf.mxu1 }
 0x107   :  { %v657_v13 = vadd.f32 %v656_v61, %v1664_v30  ;;  %v753_v21 = vadd.f32 %v752_v60, %v704_v11 }
 0x108   :  { %v803_v62 = vpop.f32.mrf.mxu0 }
 0x109   :  { %v802_v28 = vadd.f32 %v801_v56, %v753_v21 }
 0x10b   :  { %v822_v35 = vmax.f32 %v821_v26, %v802_v28 }
 0x10c   :  { %v705_v63 = vpop.f32.mrf.mxu2 }
 0x10d   :  { %v706_v22 = vadd.f32 %v705_v63, %v657_v13 }
 0x10e   :  { %v754_v0 = vpop.f32.mrf.mxu3  ;;  %v659_v1 = vpop.f32.mrf.mxu1 }
 0x10f   :  { %v755_v29 = vadd.f32 %v754_v0, %v706_v22 }
 0x110   :  { %v806_v2 = vpop.f32.mrf.mxu0 }
 0x111   :  { %v804_v36 = vadd.f32 %v803_v62, %v755_v29 }
 0x113   :  { %v825_v48 = vmax.f32 %v824_v41, %v804_v36 }
 0x114   :  { %v708_v40 = vpop.f32.mrf.mxu2 }
 0x116   :  { %v757_v3 = vpop.f32.mrf.mxu3  ;;  %v661_v4 = vpop.f32.mrf.mxu1 }
 0x118   :  { %v808_v5 = vpop.f32.mrf.mxu0 }
 0x11c   :  { %v710_v7 = vpop.f32.mrf.mxu2 }
 0x11e   :  { %v759_v8 = vpop.f32.mrf.mxu3  ;;  %v664_v9 = vpop.f32.mrf.mxu1 }
 0x11f   :  { %v665_v16 = vadd.f32 %v664_v9, %v1636_v19  ;;  %v660_v19 = vadd.f32 %v659_v1, %v1671_v38 }
 0x120   :  { %v811_v12 = vpop.f32.mrf.mxu0 }
 0x121   :  { %v709_v49 = vadd.f32 %v708_v40, %v660_v19 }
 0x123   :  { %v758_v54 = vadd.f32 %v757_v3, %v709_v49 }
 0x124   :  { %v713_v17 = vpop.f32.mrf.mxu2 }
 0x125   :  { %v714_v23 = vadd.f32 %v713_v17, %v665_v16  ;;  %v807_v41 = vadd.f32 %v806_v2, %v758_v54 }
 0x126   :  { %v762_v24 = vpop.f32.mrf.mxu3  ;;  %v666_v25 = vpop.f32.mrf.mxu1 }
 0x127   :  { %v763_v27 = vadd.f32 %v762_v24, %v714_v23  ;;  %v667_v14 = vadd.f32 %v666_v25, %v1666_v31  ;;  %v662_v31 = vadd.f32 %v661_v4, %v1677_v42  ;;  %v828_v4 = vmax.f32 %v827_v20, %v807_v41 }
 0x128   :  { %v813_v33 = vpop.f32.mrf.mxu0 }
 0x129   :  { %v812_v32 = vadd.f32 %v811_v12, %v763_v27  ;;  %v711_v55 = vadd.f32 %v710_v7, %v662_v31 }
 0x12b   :  { %v823_v45 = vmax.f32 %v822_v35, %v812_v32  ;;  %v760_v1 = vadd.f32 %v759_v8, %v711_v55 }
 0x12c   :  { %v715_v18 = vpop.f32.mrf.mxu2 }
 0x12d   :  { %v716_v37 = vadd.f32 %v715_v18, %v667_v14  ;;  %v837_v52 = vadd.f32 %v1280_v46, %v823_v45  ;;  %v809_v7 = vadd.f32 %v808_v5, %v760_v1 }
 0x12e   :  { %v764_v30 = vpop.f32.mrf.mxu3  ;;  %v669_v44 = vpop.f32.mrf.mxu1 }
 0x12f   :  { %v765_v47 = vadd.f32 %v764_v30, %v716_v37  ;;  %v670_v26 = vadd.f32 %v669_v44, %v1673_v39  ;;  %v841_v61 = vmax.f32 %v837_v52, 0.0  ;;  %v831_v8 = vmax.f32 %v830_v58, %v809_v7 }
 0x130   :  { %v816_v60 = vpop.f32.mrf.mxu0 }
 0x131   :  { %v814_v51 = vadd.f32 %v813_v33, %v765_v47 }
 0x133   :  { %v826_v53 = vmax.f32 %v825_v48, %v814_v51 }
 0x134   :  { %v718_v34 = vpop.f32.mrf.mxu2 }
 0x135   :  { %v838_v56 = vadd.f32 %v1280_v46, %v826_v53  ;;  %v719_v38 = vadd.f32 %v718_v34, %v670_v26 }
 0x136   :  { %v767_v59 = vpop.f32.mrf.mxu3  ;;  %v671_v0 = vpop.f32.mrf.mxu1 }
 0x137   :  { %v842_v62 = vmax.f32 %v838_v56, 0.0  ;;  %v768_v63 = vadd.f32 %v767_v59, %v719_v38  ;;  %v672_v39 = vadd.f32 %v671_v0, %v1679_v43 }
 0x138   :  { %v818_v2 = vpop.f32.mrf.mxu0 }
 0x139   :  { %v1248_v40 = vpack.c.bf16 %v842_v62, %v841_v61  ;;  %v817_v42 = vadd.f32 %v816_v60, %v768_v63 }
 0x13b   :  { %1249 = vst [vmem:[%s1732_s3] sm:$0xff] %v1248_v40   ;;  %v829_v11 = vmax.f32 %v828_v4, %v817_v42 }
 0x13c   :  { %v720_v3 = vpop.f32.mrf.mxu2 }
 0x13d   :  { %v721_v9 = vadd.f32 %v720_v3, %v672_v39  ;;  %v839_v16 = vadd.f32 %v1280_v46, %v829_v11 }
 0x13e   :  { %v769_v10 = vpop.f32.mrf.mxu3 }
 0x13f   :  { %v770_v12 = vadd.f32 %v769_v10, %v721_v9  ;;  %v843_v43 = vmax.f32 %v839_v16, 0.0 }
 0x141   :  { %v819_v13 = vadd.f32 %v818_v2, %v770_v12 }
 0x143   :  { %v832_v17 = vmax.f32 %v831_v8, %v819_v13 }
 0x145   :  { %v840_v21 = vadd.f32 %v1280_v46, %v832_v17 }
 0x147   :  { %v844_v22 = vmax.f32 %v840_v21, 0.0 }
 0x149   :  { %v1253_v23 = vpack.c.bf16 %v844_v22, %v843_v43 }
 0x14b   :  { %1255 = vst [vmem:[%s1732_s3 + $0x8] sm:$0xff] %v1253_v23  }

// kernel: neural_net_forward.7
= control target key start
LH: loop header
LB: loop body
LE: loop exit
PB: predicated region body
PF: predicated region fallthrough
CT: control target
= control target key end

     0   :  { %s1656_s1 = inlined_call_operand.vmem [shape: bf16[1152,128], index: 1, kind: input, shape index: {}]   ;;  %s1657_s2 = inlined_call_operand.vmem [shape: f32[1,128], index: 2, kind: input, shape index: {}]   ;;  %s1658_s0 = inlined_call_operand.vmem [shape: bf16[16,1152], index: 0, kind: input, shape index: {}]   ;;  %s1659_s4 = inlined_call_operand.vmem [shape: f32[1,128], index: 4, kind: input, shape index: {}]   ;;  %s1660_s3 = inlined_call_operand.vmem [shape: bf16[128,128], index: 3, kind: input, shape index: {}]   ;;  %s1661_s5 = inlined_call_operand.vmem [shape: f32[16,128], index: 5, kind: output, shape index: {}]  }
   0x1   :  { %v1245_v0 = vld [vmem:[%s1656_s1 + $0x38] sm:$0xff]  ;;  %v1244_v4 = vld [vmem:[%s1656_s1 + $0x30] sm:$0xff]  ;;  %v1243_v8 = vld [vmem:[%s1656_s1 + $0x28] sm:$0xff] }
   0x2   :  { %v1261_v1 = vld [vmem:[%s1656_s1 + $0xb8] sm:$0xff]  ;;  %656 = vmatpush.bf16.msra.mxu0 %v1245_v0  ;;  %v1260_v5 = vld [vmem:[%s1656_s1 + $0xb0] sm:$0xff]  ;;  %v1259_v9 = vld [vmem:[%s1656_s1 + $0xa8] sm:$0xff] }
   0x3   :  { %v1253_v2 = vld [vmem:[%s1656_s1 + $0x78] sm:$0xff]  ;;  %684 = vmatpush.bf16.msra.mxu2 %v1261_v1  ;;  %v1252_v6 = vld [vmem:[%s1656_s1 + $0x70] sm:$0xff]  ;;  %v1251_v10 = vld [vmem:[%s1656_s1 + $0x68] sm:$0xff] }
   0x4   :  { %v1269_v3 = vld [vmem:[%s1656_s1 + $0xf8] sm:$0xff]  ;;  %670 = vmatpush.bf16.msra.mxu1 %v1253_v2  ;;  %v1268_v7 = vld [vmem:[%s1656_s1 + $0xf0] sm:$0xff]  ;;  %v1267_v11 = vld [vmem:[%s1656_s1 + $0xe8] sm:$0xff] }
   0x5   :  { %698 = vmatpush.bf16.msra.mxu3 %v1269_v3  ;;  %v1242_v12 = vld [vmem:[%s1656_s1 + $0x20] sm:$0xff]  ;;  %v1241_v16 = vld [vmem:[%s1656_s1 + $0x18] sm:$0xff]  ;;  %v1240_v20 = vld [vmem:[%s1656_s1 + $0x10] sm:$0xff] }
   0x6   :  { %657 = vmatpush.bf16.msra.mxu0 %v1244_v4  ;;  %v1258_v13 = vld [vmem:[%s1656_s1 + $0xa0] sm:$0xff]  ;;  %v1257_v17 = vld [vmem:[%s1656_s1 + $0x98] sm:$0xff]  ;;  %v1256_v21 = vld [vmem:[%s1656_s1 + $0x90] sm:$0xff] }
   0x7   :  { %685 = vmatpush.bf16.msra.mxu2 %v1260_v5  ;;  %v1250_v14 = vld [vmem:[%s1656_s1 + $0x60] sm:$0xff]  ;;  %v1249_v18 = vld [vmem:[%s1656_s1 + $0x58] sm:$0xff]  ;;  %v1248_v22 = vld [vmem:[%s1656_s1 + $0x50] sm:$0xff] }
   0x8   :  { %671 = vmatpush.bf16.msra.mxu1 %v1252_v6  ;;  %v1266_v15 = vld [vmem:[%s1656_s1 + $0xe0] sm:$0xff]  ;;  %v1265_v19 = vld [vmem:[%s1656_s1 + $0xd8] sm:$0xff]  ;;  %v1264_v23 = vld [vmem:[%s1656_s1 + $0xd0] sm:$0xff] }
   0x9   :  { %699 = vmatpush.bf16.msra.mxu3 %v1268_v7  ;;  %v1239_v24 = vld [vmem:[%s1656_s1 + $0x8] sm:$0xff]  ;;  %v1238_v28 = vld [vmem:[%s1656_s1] sm:$0xff]  ;;  %v1277_v30 = vld [vmem:[%s1656_s1 + $0x138] sm:$0xff] }
   0xa   :  { %658 = vmatpush.bf16.msra.mxu0 %v1243_v8  ;;  %v1255_v25 = vld [vmem:[%s1656_s1 + $0x88] sm:$0xff]  ;;  %v1254_v29 = vld [vmem:[%s1656_s1 + $0x80] sm:$0xff]  ;;  %v1293_v31 = vld [vmem:[%s1656_s1 + $0x1b8] sm:$0xff] }
   0xb   :  { %686 = vmatpush.bf16.msra.mxu2 %v1259_v9  ;;  %v1247_v26 = vld [vmem:[%s1656_s1 + $0x48] sm:$0xff]  ;;  %v1246_v32 = vld [vmem:[%s1656_s1 + $0x40] sm:$0xff]  ;;  %v1285_v38 = vld [vmem:[%s1656_s1 + $0x178] sm:$0xff] }
   0xc   :  { %672 = vmatpush.bf16.msra.mxu1 %v1251_v10  ;;  %v1263_v27 = vld [vmem:[%s1656_s1 + $0xc8] sm:$0xff]  ;;  %v1262_v33 = vld [vmem:[%s1656_s1 + $0xc0] sm:$0xff]  ;;  %v1301_v39 = vld [vmem:[%s1656_s1 + $0x1f8] sm:$0xff] }
   0xd   :  { %700 = vmatpush.bf16.msra.mxu3 %v1267_v11  ;;  %v875_v34 = vld [vmem:[%s1658_s0] sm:$0xf]  ;;  %v1233_v35 = vld [vmem:[%s1658_s0 + $0x20] sm:$0xf0]  ;;  %v883_v36 = vld [vmem:[%s1658_s0 + $0x8] sm:$0xf] }
   0xe   :  { %659 = vmatpush.bf16.msra.mxu0 %v1242_v12  ;;  %v1234_v37 = vld [vmem:[%s1658_s0 + $0x28] sm:$0xf0]  ;;  %v1229_v40 = vld [vmem:[%s1658_s0 + $0x4] sm:$0xf]  ;;  %v877_v41 = vld [vmem:[%s1658_s0 + $0x24] sm:$0xf0]  ;;  %v876_v44 = vor.u32 %v1233_v35, %v875_v34 }
   0xf   :  { %687 = vmatpush.bf16.msra.mxu2 %v1258_v13  ;;  %v1230_v42 = vld [vmem:[%s1658_s0 + $0xc] sm:$0xf]  ;;  %v885_v43 = vld [vmem:[%s1658_s0 + $0x2c] sm:$0xf0]  ;;  %v884_v45 = vor.u32 %v1234_v37, %v883_v36  ;;  %v880_v48 = vor.u32 %v1229_v40, %v877_v41  ;;  %v1274_v56 = vld [vmem:[%s1656_s1 + $0x120] sm:$0xff] }
  0x10   :  { %673 = vmatpush.bf16.msra.mxu1 %v1250_v14  ;;  %v1276_v46 = vld [vmem:[%s1656_s1 + $0x130] sm:$0xff]  ;;  %v888_v49 = vor.u32 %v1230_v42, %v885_v43  ;;  %v1275_v52 = vld [vmem:[%s1656_s1 + $0x128] sm:$0xff]  ;;  %v1290_v57 = vld [vmem:[%s1656_s1 + $0x1a0] sm:$0xff] }
  0x11   :  { %701 = vmatpush.bf16.msra.mxu3 %v1266_v15  ;;  %v1292_v47 = vld [vmem:[%s1656_s1 + $0x1b0] sm:$0xff]  ;;  %v1291_v53 = vld [vmem:[%s1656_s1 + $0x1a8] sm:$0xff]  ;;  %v1282_v58 = vld [vmem:[%s1656_s1 + $0x160] sm:$0xff] }
  0x12   :  { %660 = vmatpush.bf16.msra.mxu0 %v1241_v16  ;;  %v1284_v50 = vld [vmem:[%s1656_s1 + $0x170] sm:$0xff]  ;;  %v1283_v54 = vld [vmem:[%s1656_s1 + $0x168] sm:$0xff]  ;;  %v1298_v59 = vld [vmem:[%s1656_s1 + $0x1e0] sm:$0xff] }
  0x13   :  { %688 = vmatpush.bf16.msra.mxu2 %v1257_v17  ;;  %v1300_v51 = vld [vmem:[%s1656_s1 + $0x1f0] sm:$0xff]  ;;  %v1299_v55 = vld [vmem:[%s1656_s1 + $0x1e8] sm:$0xff]  ;;  %v1273_v60 = vld [vmem:[%s1656_s1 + $0x118] sm:$0xff] }
  0x14   :  { %674 = vmatpush.bf16.msra.mxu1 %v1249_v18  ;;  %v1289_v61 = vld [vmem:[%s1656_s1 + $0x198] sm:$0xff]  ;;  %v1272_v0 = vld [vmem:[%s1656_s1 + $0x110] sm:$0xff]  ;;  %v1271_v4 = vld [vmem:[%s1656_s1 + $0x108] sm:$0xff] }
  0x15   :  { %702 = vmatpush.bf16.msra.mxu3 %v1265_v19  ;;  %v1281_v62 = vld [vmem:[%s1656_s1 + $0x158] sm:$0xff]  ;;  %v1288_v1 = vld [vmem:[%s1656_s1 + $0x190] sm:$0xff]  ;;  %v1287_v5 = vld [vmem:[%s1656_s1 + $0x188] sm:$0xff] }
  0x16   :  { %661 = vmatpush.bf16.msra.mxu0 %v1240_v20  ;;  %v1297_v63 = vld [vmem:[%s1656_s1 + $0x1d8] sm:$0xff]  ;;  %v1280_v2 = vld [vmem:[%s1656_s1 + $0x150] sm:$0xff]  ;;  %v1279_v6 = vld [vmem:[%s1656_s1 + $0x148] sm:$0xff] }
  0x17   :  { %689 = vmatpush.bf16.msra.mxu2 %v1256_v21  ;;  %v1296_v3 = vld [vmem:[%s1656_s1 + $0x1d0] sm:$0xff]  ;;  %v1295_v7 = vld [vmem:[%s1656_s1 + $0x1c8] sm:$0xff]  ;;  %v1270_v8 = vld [vmem:[%s1656_s1 + $0x100] sm:$0xff] }
  0x18   :  { %675 = vmatpush.bf16.msra.mxu1 %v1248_v22  ;;  %v1286_v9 = vld [vmem:[%s1656_s1 + $0x180] sm:$0xff]  ;;  %v1309_v10 = vld [vmem:[%s1656_s1 + $0x238] sm:$0xff]  ;;  %v891_v11 = vld [vmem:[%s1658_s0 + $0x10] sm:$0xf] }
  0x19   :  { %703 = vmatpush.bf16.msra.mxu3 %v1264_v23  ;;  %v1235_v12 = vld [vmem:[%s1658_s0 + $0x30] sm:$0xf0]  ;;  %v899_v13 = vld [vmem:[%s1658_s0 + $0x18] sm:$0xf]  ;;  %v1236_v14 = vld [vmem:[%s1658_s0 + $0x38] sm:$0xf0] }
  0x1a   :  { %662 = vmatpush.bf16.msra.mxu0 %v1239_v24  ;;  %v1278_v15 = vld [vmem:[%s1656_s1 + $0x140] sm:$0xff]  ;;  %v1231_v17 = vld [vmem:[%s1658_s0 + $0x14] sm:$0xf]  ;;  %v893_v18 = vld [vmem:[%s1658_s0 + $0x34] sm:$0xf0]  ;;  %v892_v21 = vor.u32 %v1235_v12, %v891_v11  ;;  %v900_v22 = vor.u32 %v1236_v14, %v899_v13 }
  0x1b   :  { %690 = vmatpush.bf16.msra.mxu2 %v1255_v25  ;;  %v1294_v16 = vld [vmem:[%s1656_s1 + $0x1c0] sm:$0xff]  ;;  %v1232_v19 = vld [vmem:[%s1658_s0 + $0x1c] sm:$0xf]  ;;  %v896_v23 = vor.u32 %v1231_v17, %v893_v18  ;;  %v1308_v25 = vld [vmem:[%s1656_s1 + $0x230] sm:$0xff] }
  0x1c   :  { %676 = vmatpush.bf16.msra.mxu1 %v1247_v26  ;;  %v901_v20 = vld [vmem:[%s1658_s0 + $0x3c] sm:$0xf0]  ;;  %v1307_v26 = vld [vmem:[%s1656_s1 + $0x228] sm:$0xff]  ;;  %v1317_v35 = vld [vmem:[%s1660_s3 + $0x38] sm:$0xff] }
  0x1d   :  { %704 = vmatpush.bf16.msra.mxu3 %v1263_v27  ;;  %v904_v24 = vor.u32 %v1232_v19, %v901_v20  ;;  %v1306_v27 = vld [vmem:[%s1656_s1 + $0x220] sm:$0xff]  ;;  %v1316_v36 = vld [vmem:[%s1660_s3 + $0x30] sm:$0xff]  ;;  %v1315_v37 = vld [vmem:[%s1660_s3 + $0x28] sm:$0xff] }
  0x1e   :  { %663 = vmatpush.bf16.msra.mxu0 %v1238_v28  ;;  %v1305_v28 = vld [vmem:[%s1656_s1 + $0x218] sm:$0xff]  ;;  %v1312_v43 = vld [vmem:[%s1660_s3 + $0x10] sm:$0xff]  ;;  %v1319_v19 = vld [vmem:[%s1659_s4] ss:$0 sm:$0xff] }
  0x1f   :  { %691 = vmatpush.bf16.msra.mxu2 %v1254_v29  ;;  %v1304_v29 = vld [vmem:[%s1656_s1 + $0x210] sm:$0xff]  ;;  %v1313_v40 = vld [vmem:[%s1660_s3 + $0x18] sm:$0xff] }
  0x20   :  { %677 = vmatpush.bf16.msra.mxu1 %v1246_v32  ;;  %v907_v32 = vld [vmem:[%s1658_s0 + $0x20] sm:$0xf] }
  0x21   :  { %705 = vmatpush.bf16.msra.mxu3 %v1262_v33  ;;  %664 = vmatmul.bf16.vlgmr.msra.gmra.mxu0 %v876_v44  ;;  %v1237_v33 = vld [vmem:[%s1658_s0 + $0x40] sm:$0xf0] }
  0x22   :  { %712 = vmatpush.bf16.msrb.mxu0 %v1277_v30  ;;  %692 = vmatmul.bf16.vlgmr.msra.gmra.mxu2 %v884_v45  ;;  %v1303_v30 = vld [vmem:[%s1656_s1 + $0x208] sm:$0xff]  ;;  %v908_v34 = vor.u32 %v1237_v33, %v907_v32  ;;  %v1318_v45 = vld [vmem:[%s1657_s2] ss:$0 sm:$0xff] }
  0x23   :  { %740 = vmatpush.bf16.msrb.mxu2 %v1293_v31  ;;  %678 = vmatmul.bf16.vlgmr.msra.gmra.mxu1 %v880_v48  ;;  %v1302_v31 = vld [vmem:[%s1656_s1 + $0x200] sm:$0xff] }
  0x24   :  { %726 = vmatpush.bf16.msrb.mxu1 %v1285_v38  ;;  %706 = vmatmul.bf16.vlgmr.msra.gmra.mxu3 %v888_v49  ;;  %v1314_v38 = vld [vmem:[%s1660_s3 + $0x20] sm:$0xff] }
  0x25   :  { %754 = vmatpush.bf16.msrb.mxu3 %v1301_v39 }
  0x26   :  { %713 = vmatpush.bf16.msrb.mxu0 %v1276_v46 }
  0x27   :  { %741 = vmatpush.bf16.msrb.mxu2 %v1292_v47  ;;  %v1311_v47 = vld [vmem:[%s1660_s3 + $0x8] sm:$0xff] }
  0x28   :  { %727 = vmatpush.bf16.msrb.mxu1 %v1284_v50  ;;  %v1310_v50 = vld [vmem:[%s1660_s3] sm:$0xff] }
  0x29   :  { %755 = vmatpush.bf16.msrb.mxu3 %v1300_v51 }
  0x2a   :  { %714 = vmatpush.bf16.msrb.mxu0 %v1275_v52 }
  0x2b   :  { %742 = vmatpush.bf16.msrb.mxu2 %v1291_v53 }
  0x2c   :  { %728 = vmatpush.bf16.msrb.mxu1 %v1283_v54 }
  0x2d   :  { %756 = vmatpush.bf16.msrb.mxu3 %v1299_v55 }
  0x2e   :  { %715 = vmatpush.bf16.msrb.mxu0 %v1274_v56 }
  0x2f   :  { %743 = vmatpush.bf16.msrb.mxu2 %v1290_v57 }
  0x30   :  { %729 = vmatpush.bf16.msrb.mxu1 %v1282_v58 }
  0x31   :  { %757 = vmatpush.bf16.msrb.mxu3 %v1298_v59 }
  0x32   :  { %716 = vmatpush.bf16.msrb.mxu0 %v1273_v60 }
  0x33   :  { %744 = vmatpush.bf16.msrb.mxu2 %v1289_v61 }
  0x34   :  { %730 = vmatpush.bf16.msrb.mxu1 %v1281_v62 }
  0x35   :  { %758 = vmatpush.bf16.msrb.mxu3 %v1297_v63 }
  0x36   :  { %717 = vmatpush.bf16.msrb.mxu0 %v1272_v0 }
  0x37   :  { %745 = vmatpush.bf16.msrb.mxu2 %v1288_v1 }
  0x38   :  { %731 = vmatpush.bf16.msrb.mxu1 %v1280_v2 }
  0x39   :  { %759 = vmatpush.bf16.msrb.mxu3 %v1296_v3 }
  0x3a   :  { %718 = vmatpush.bf16.msrb.mxu0 %v1271_v4 }
  0x3b   :  { %746 = vmatpush.bf16.msrb.mxu2 %v1287_v5 }
  0x3c   :  { %732 = vmatpush.bf16.msrb.mxu1 %v1279_v6 }
  0x3d   :  { %760 = vmatpush.bf16.msrb.mxu3 %v1295_v7 }
  0x3e   :  { %719 = vmatpush.bf16.msrb.mxu0 %v1270_v8 }
  0x3f   :  { %747 = vmatpush.bf16.msrb.mxu2 %v1286_v9 }
  0x40   :  { %733 = vmatpush.bf16.msrb.mxu1 %v1278_v15 }
  0x41   :  { %761 = vmatpush.bf16.msrb.mxu3 %v1294_v16  ;;  %720 = vmatmul.bf16.vlgmr.msrb.gmra.mxu0 %v892_v21 }
  0x42   :  { %768 = vmatpush.bf16.msra.mxu0 %v1309_v10  ;;  %748 = vmatmul.bf16.vlgmr.msrb.gmra.mxu2 %v900_v22 }
  0x43   :  { %734 = vmatmul.bf16.vlgmr.msrb.gmra.mxu1 %v896_v23 }
  0x44   :  { %762 = vmatmul.bf16.vlgmr.msrb.gmra.mxu3 %v904_v24  ;;  %853 = vmatpush.bf16.msra.mxu1 %v1317_v35 }
  0x46   :  { %769 = vmatpush.bf16.msra.mxu0 %v1308_v25 }
  0x48   :  { %854 = vmatpush.bf16.msra.mxu1 %v1316_v36 }
  0x4a   :  { %770 = vmatpush.bf16.msra.mxu0 %v1307_v26 }
  0x4c   :  { %855 = vmatpush.bf16.msra.mxu1 %v1315_v37 }
  0x4e   :  { %771 = vmatpush.bf16.msra.mxu0 %v1306_v27 }
  0x50   :  { %856 = vmatpush.bf16.msra.mxu1 %v1314_v38 }
  0x52   :  { %772 = vmatpush.bf16.msra.mxu0 %v1305_v28 }
  0x54   :  { %857 = vmatpush.bf16.msra.mxu1 %v1313_v40 }
  0x56   :  { %773 = vmatpush.bf16.msra.mxu0 %v1304_v29 }
  0x58   :  { %858 = vmatpush.bf16.msra.mxu1 %v1312_v43 }
  0x5a   :  { %774 = vmatpush.bf16.msra.mxu0 %v1303_v30 }
  0x5c   :  { %859 = vmatpush.bf16.msra.mxu1 %v1311_v47 }
  0x5e   :  { %775 = vmatpush.bf16.msra.mxu0 %v1302_v31 }
  0x60   :  { %860 = vmatpush.bf16.msra.mxu1 %v1310_v50 }
  0x61   :  { %776 = vmatmul.bf16.vlgmr.msra.gmra.mxu0 %v908_v34 }
  0x9e   :  { %v665_v39 = vpop.f32.mrf.mxu0 }
  0x9f   :  { %v666_v48 = vadd.f32 %v1318_v45, %v665_v39 }
  0xa0   :  { %v679_v41 = vpop.f32.mrf.mxu1 }
  0xa1   :  { %v680_v52 = vadd.f32 %v679_v41, %v666_v48 }
  0xa5   :  { %v693_v42 = vpop.f32.mrf.mxu2 }
  0xa6   :  { %v667_v44 = vpop.f32.mrf.mxu0  ;;  %v694_v56 = vadd.f32 %v693_v42, %v680_v52 }
  0xa7   :  { %v707_v46 = vpop.f32.mrf.mxu3  ;;  %v668_v54 = vadd.f32 %v1318_v45, %v667_v44 }
  0xa8   :  { %v681_v49 = vpop.f32.mrf.mxu1  ;;  %v708_v59 = vadd.f32 %v707_v46, %v694_v56 }
  0xa9   :  { %v682_v57 = vadd.f32 %v681_v49, %v668_v54 }
  0xad   :  { %v695_v51 = vpop.f32.mrf.mxu2 }
  0xae   :  { %v696_v61 = vadd.f32 %v695_v51, %v682_v57 }
  0xaf   :  { %v709_v55 = vpop.f32.mrf.mxu3 }
  0xb0   :  { %v710_v1 = vadd.f32 %v709_v55, %v696_v61 }
  0xbe   :  { %v721_v53 = vpop.f32.mrf.mxu0 }
  0xbf   :  { %v722_v63 = vadd.f32 %v721_v53, %v708_v59 }
  0xc0   :  { %v735_v58 = vpop.f32.mrf.mxu1 }
  0xc1   :  { %v736_v2 = vadd.f32 %v735_v58, %v722_v63 }
  0xc5   :  { %v749_v60 = vpop.f32.mrf.mxu2 }
  0xc6   :  { %v723_v62 = vpop.f32.mrf.mxu0  ;;  %v750_v7 = vadd.f32 %v749_v60, %v736_v2 }
  0xc7   :  { %v763_v0 = vpop.f32.mrf.mxu3  ;;  %v724_v3 = vadd.f32 %v723_v62, %v710_v1 }
  0xc8   :  { %v737_v4 = vpop.f32.mrf.mxu1  ;;  %v764_v11 = vadd.f32 %v763_v0, %v750_v7 }
  0xc9   :  { %v738_v8 = vadd.f32 %v737_v4, %v724_v3 }
  0xcd   :  { %v751_v5 = vpop.f32.mrf.mxu2 }
  0xce   :  { %v752_v9 = vadd.f32 %v751_v5, %v738_v8 }
  0xcf   :  { %v765_v10 = vpop.f32.mrf.mxu3 }
  0xd0   :  { %v766_v12 = vadd.f32 %v765_v10, %v752_v9 }
  0xde   :  { %v777_v6 = vpop.f32.mrf.mxu0 }
  0xdf   :  { %v778_v13 = vadd.f32 %v777_v6, %v764_v11 }
  0xe1   :  { %v782_v16 = vmax.f32 %v778_v13, 0.0 }
  0xe6   :  { %v779_v14 = vpop.f32.mrf.mxu0 }
  0xe7   :  { %v780_v15 = vadd.f32 %v779_v14, %v766_v12 }
  0xe9   :  { %v783_v17 = vmax.f32 %v780_v15, 0.0 }
  0xeb   :  { %v784_v18 = vpack.c.bf16 %v783_v17, %v782_v16 }
  0xed   :  { %861 = vmatmul.bf16.vlgmr.msra.gmra.mxu1 %v784_v18 }
 0x16a   :  { %v862_v20 = vpop.f32.mrf.mxu1 }
 0x16b   :  { %v863_v21 = vadd.f32 %v1319_v19, %v862_v20 }
 0x16d   :  { %867 = vst [vmem:[%s1661_s5] sm:$0xff] %v863_v21 }
 0x172   :  { %v864_v22 = vpop.f32.mrf.mxu1 }
 0x173   :  { %v865_v23 = vadd.f32 %v1319_v19, %v864_v22 }
 0x175   :  { %868 = vst [vmem:[%s1661_s5 + $0x8] sm:$0xff] %v865_v23 }

</bundles_post_ra>
